<compile_context>
chip_gen: v6e
topology: v6e:2x2x1
jax: 0.10.0
libtpu: 0.0.40
codegen_flags: <defaults>
</compile_context>

<pallas_src>
import functools

import jax
import jax.numpy as jnp
from jax.experimental import pallas as pl
from jax.experimental.pallas import tpu as pltpu


# --------------------------------------------------------------------------
# kernel
# --------------------------------------------------------------------------
def _resnet_block_kernel(*refs, use_cond, has_res_conv, mxu_dtype):
    refs = list(refs)
    x_ref = refs.pop(0)                               # (bt, C, L) f32
    if use_cond:
        sc_ref = refs.pop(0)                          # (bt, O, 1) f32 scale
        sh_ref = refs.pop(0)                          # (bt, O, 1) f32 shift
    (w1_ref, b1_ref, g1w_ref, g1b_ref,
     w2_ref, b2_ref, g2w_ref, g2b_ref, avg_ref) = refs[:9]
    refs = refs[9:]
    if has_res_conv:
        rw_ref, rb_ref = refs[:2]
        refs = refs[2:]
    out_ref = refs[0]                                 # (bt, O, L)

    bt, O, L = out_ref.shape
    C = x_ref.shape[1]
    N = bt * L

    # ---- pack bt samples along the lane axis: (bt, C, L) -> (C, bt*L)
    if bt > 1:
        xp = jnp.concatenate([x_ref[i] for i in range(bt)], axis=1)
    else:
        xp = x_ref[0]

    def conv3(a, w_ref, b_ref):
        # 3-tap 'same' conv as three accumulating MXU dots.
        #   a: (Ci, N) f32,  w_ref: (3, O, Ci) standardized taps [-1, 0, +1].
        # Edge masking is applied (in f32, v5e-safe) to the element that would
        # wrap across a per-sample boundary; the cast to mxu_dtype happens
        # before pltpu.roll so the big rolled temporaries are bf16 on v6e/v7x.
        lane = jax.lax.broadcasted_iota(jnp.int32, a.shape, 1)
        a_c = a.astype(mxu_dtype)
        a_m1 = pltpu.roll(
            jnp.where(lane % L == L - 1, 0.0, a).astype(mxu_dtype),
            shift=1, axis=1)                          # -> a(l-1), 0 at l%L==0
        a_p1 = pltpu.roll(
            jnp.where(lane % L == 0, 0.0, a).astype(mxu_dtype),
            shift=N - 1, axis=1)                      # -> a(l+1), 0 at l%L==L-1
        h = jnp.dot(w_ref[0], a_m1, preferred_element_type=jnp.float32)
        h = h + jnp.dot(w_ref[1], a_c, preferred_element_type=jnp.float32)
        h = h + jnp.dot(w_ref[2], a_p1, preferred_element_type=jnp.float32)
        return h + b_ref[...]

    avg = avg_ref[...]                                # (O, O) f32, rows pre-scaled

    def norm_act(h, gw_ref, gb_ref, with_ss):
        # GroupNorm (+ optional FiLM scale/shift) + SiLU, per packed sample.
        gw, gb = gw_ref[...], gb_ref[...]             # (O, 1)
        outs = []
        for i in range(bt):
            hi = h[:, i * L:(i + 1) * L] if bt > 1 else h
            s1 = jnp.sum(hi, axis=1, keepdims=True)                   # (O, 1)
            gmean = jnp.dot(avg, s1, preferred_element_type=jnp.float32)
            hc = hi - gmean
            s2 = jnp.sum(hc * hc, axis=1, keepdims=True)
            gvar = jnp.dot(avg, s2, preferred_element_type=jnp.float32)
            yi = hc * jax.lax.rsqrt(gvar + 1e-5) * gw + gb
            if with_ss:
                yi = yi * (sc_ref[i] + 1.0) + sh_ref[i]
            yi = yi * jax.nn.sigmoid(yi)                              # SiLU
            outs.append(yi)
        return jnp.concatenate(outs, axis=1) if bt > 1 else outs[0]

    # ---- block1: WS-conv3 -> GroupNorm -> scale/shift -> SiLU
    h = conv3(xp, w1_ref, b1_ref)
    h = norm_act(h, g1w_ref, g1b_ref, with_ss=use_cond)
    # ---- block2: WS-conv3 -> GroupNorm -> SiLU
    h = conv3(h, w2_ref, b2_ref)
    h = norm_act(h, g2w_ref, g2b_ref, with_ss=False)

    # ---- residual path
    if has_res_conv:
        res = jnp.dot(rw_ref[...], xp.astype(mxu_dtype),
                      preferred_element_type=jnp.float32) + rb_ref[...]
    else:
        res = xp                                      # exact identity skip

    y = (h + res).astype(out_ref.dtype)               # (O, bt*L)
    if bt > 1:
        for i in range(bt):
            out_ref[i] = y[:, i * L:(i + 1) * L]
    else:
        out_ref[0] = y


# --------------------------------------------------------------------------
# wrapper helpers
# --------------------------------------------------------------------------
@functools.lru_cache(maxsize=1)
def _buffered_params_supported():
    """Explicit capability check: tiny probe compile of pl.Buffered(1)."""
    if not hasattr(pl, "Buffered"):
        return False
    try:
        def _probe(a_ref, o_ref):
            o_ref[...] = a_ref[...] + 1.0
        out = pl.pallas_call(
            _probe,
            out_shape=jax.ShapeDtypeStruct((8, 128), jnp.float32),
            grid=(2,),
            in_specs=[pl.BlockSpec((8, 128), lambda i: (0, 0),
                                   pipeline_mode=pl.Buffered(1))],
            out_specs=pl.BlockSpec((8, 128), lambda i: (0, 0)),
        )(jnp.zeros((8, 128), jnp.float32))
        jax.block_until_ready(out)
        return True
    except Exception:
        return False


def _vmem_ceiling_bytes():
    try:
        cap = int(pltpu.get_tpu_info().vmem_capacity_bytes)
    except Exception:
        cap = 64 << 20                                # conservative (v7x per-TC)
    return max(32 << 20, min(int(0.75 * cap), cap - (12 << 20)))


def _default_batch_tile(B, L):
    # Fill the 256-wide v6e/v7x MXU lane dim when L is small, but keep >= 2
    # grid steps for DMA/compute overlap when possible.
    want = max(1, 256 // L)
    divs = [d for d in range(1, B + 1) if B % d == 0]
    cands = [d for d in divs if d <= want] or [1]
    bt = max(cands)
    if B // bt < 2:
        smaller = [d for d in cands if B // d >= 2]
        if smaller:
            bt = max(smaller)
    return bt


# --------------------------------------------------------------------------
# public wrapper
# --------------------------------------------------------------------------
def resnet_block_pallas(x, time_emb, class_emb, params, *, groups,
                        mxu_dtype=jnp.bfloat16, batch_tile=None):
    """Fused ResnetBlock forward.  x: (B, C, L) float32, NCL (PyTorch) layout."""
    B, C, L = x.shape
    O = params['b1'].shape[0]
    has_res_conv = 'rw' in params
    use_cond = (time_emb is not None) or (class_emb is not None)

    assert O % groups == 0, "GroupNorm requires dim_out % groups == 0"
    assert L % 128 == 0, "L must be a multiple of 128 (lane-dense blocks)"
    # TODO(synk): pad L to a lane multiple and mask GroupNorm stats for odd L.

    bt = _default_batch_tile(B, L) if batch_tile is None else int(batch_tile)
    assert B % bt == 0, "batch_tile must divide B"

    ws_eps = 1e-5 if x.dtype == jnp.float32 else 1e-3  # PyTorch WS-conv rule

    def standardize(w):
        # (O, Ci, 3) -> (3, O, Ci), standardized per output channel (unbiased=False)
        m = jnp.mean(w, axis=(1, 2), keepdims=True)
        v = jnp.mean((w - m) ** 2, axis=(1, 2), keepdims=True)
        wn = (w - m) * jax.lax.rsqrt(v + ws_eps)
        return jnp.transpose(wn, (2, 0, 1))

    col = lambda v: v.astype(jnp.float32)[:, None]

    # group-averaging matrix: avg[o,p] = [group(o)==group(p)] / ((O/groups)*L)
    gid = jnp.arange(O) // (O // groups)
    avg = (gid[:, None] == gid[None, :]).astype(jnp.float32) / float((O // groups) * L)

    batched_inputs = [x.astype(jnp.float32)]
    if use_cond:
        cond = jnp.concatenate(
            [e for e in (time_emb, class_emb) if e is not None], axis=-1)
        cond = cond * jax.nn.sigmoid(cond)                            # SiLU
        ss = cond @ params['mlp_w'].T + params['mlp_b']               # (B, 2*O) one GEMM
        scale = ss[:, :O].astype(jnp.float32)[:, :, None]             # (B, O, 1)
        shift = ss[:, O:].astype(jnp.float32)[:, :, None]             # (B, O, 1)
        batched_inputs += [scale, shift]

    param_inputs = [
        standardize(params['w1']).astype(mxu_dtype), col(params['b1']),
        col(params['g1w']), col(params['g1b']),
        standardize(params['w2']).astype(mxu_dtype), col(params['b2']),
        col(params['g2w']), col(params['g2b']),
        avg,
    ]
    if has_res_conv:
        param_inputs += [params['rw'].astype(mxu_dtype), col(params['rb'])]
    inputs = batched_inputs + param_inputs

    kernel = functools.partial(_resnet_block_kernel, use_cond=use_cond,
                               has_res_conv=has_res_conv, mxu_dtype=mxu_dtype)

    # ---- scheduler hint
    flops = 2 * B * L * (3 * O * C + 3 * O * O + (O * C if has_res_conv else 0))
    transcendentals = 2 * B * O * L                                   # two SiLUs
    bytes_accessed = int(sum(int(a.size) * a.dtype.itemsize for a in inputs)
                         + B * O * L * x.dtype.itemsize)
    cost = pl.CostEstimate(flops=int(flops), transcendentals=int(transcendentals),
                           bytes_accessed=bytes_accessed)

    # ---- VMEM budget (chip-aware ceiling)
    buffered = _buffered_params_supported()
    mxu_isz = jnp.dtype(mxu_dtype).itemsize
    N = bt * L
    par_bytes = sum(int(a.size) * a.dtype.itemsize for a in param_inputs)
    blk_bytes = 2 * 4 * N * (C + O) + (2 * 4 * 2 * bt * O if use_cond else 0)
    tmp_bytes = 4 * N * (C + 4 * O) + mxu_isz * N * 3 * max(C, O)
    needed = (1 if buffered else 2) * par_bytes + blk_bytes + tmp_bytes + (8 << 20)
    vmem_limit = int(max(32 << 20, min(needed, _vmem_ceiling_bytes())))

    def const_spec(shape):
        idx = lambda b, _z=(0,) * len(shape): _z
        if buffered:
            return pl.BlockSpec(shape, idx, pipeline_mode=pl.Buffered(1))
        return pl.BlockSpec(shape, idx)

    in_specs = [pl.BlockSpec((bt, C, L), lambda b: (b, 0, 0))]
    if use_cond:
        in_specs += [pl.BlockSpec((bt, O, 1), lambda b: (b, 0, 0)),
                     pl.BlockSpec((bt, O, 1), lambda b: (b, 0, 0))]
    in_specs += [const_spec(a.shape) for a in param_inputs]

    return pl.pallas_call(
        kernel,
        out_shape=jax.ShapeDtypeStruct((B, O, L), x.dtype),
        grid_spec=pltpu.PrefetchScalarGridSpec(
            num_scalar_prefetch=0,
            grid=(B // bt,),
            in_specs=in_specs,
            out_specs=pl.BlockSpec((bt, O, L), lambda b: (b, 0, 0)),
        ),
        compiler_params=pltpu.CompilerParams(
            dimension_semantics=("parallel",),
            vmem_limit_bytes=vmem_limit),
        cost_estimate=cost,
    )(*inputs)


# --------------------------------------------------------------------------
# pure-JAX reference (for correctness check)
# --------------------------------------------------------------------------
def ref_forward(x, time_emb, class_emb, params, groups):
    ws_eps = 1e-5 if x.dtype == jnp.float32 else 1e-3
    silu = lambda a: a * jax.nn.sigmoid(a)
    hp = jax.lax.Precision.HIGHEST

    def ws_conv3(x, w, b):
        m = jnp.mean(w, axis=(1, 2), keepdims=True)
        v = jnp.mean((w - m) ** 2, axis=(1, 2), keepdims=True)
        wn = (w - m) / jnp.sqrt(v + ws_eps)
        y = jax.lax.conv_general_dilated(x, wn, (1,), ((1, 1),),
                                         dimension_numbers=('NCH', 'OIH', 'NCH'),
                                         precision=hp)
        return y + b[None, :, None]

    def gnorm(h, gw, gb):
        Bb, Ch, L = h.shape
        hg = h.reshape(Bb, groups, Ch // groups, L)
        m = hg.mean(axis=(2, 3), keepdims=True)
        v = ((hg - m) ** 2).mean(axis=(2, 3), keepdims=True)
        hn = ((hg - m) / jnp.sqrt(v + 1e-5)).reshape(Bb, Ch, L)
        return hn * gw[None, :, None] + gb[None, :, None]

    scale_shift = None
    if time_emb is not None or class_emb is not None:
        cond = jnp.concatenate(
            [e for e in (time_emb, class_emb) if e is not None], axis=-1)
        cond = silu(cond) @ params['mlp_w'].T + params['mlp_b']       # (B, 2O)
        O = params['b1'].shape[0]
        scale_shift = (cond[:, :O, None], cond[:, O:, None])

    h = ws_conv3(x, params['w1'], params['b1'])
    h = gnorm(h, params['g1w'], params['g1b'])
    if scale_shift is not None:
        h = h * (scale_shift[0] + 1.0) + scale_shift[1]
    h = silu(h)
    h = ws_conv3(h, params['w2'], params['b2'])
    h = gnorm(h, params['g2w'], params['g2b'])
    h = silu(h)
    if 'rw' in params:
        res = jax.lax.conv_general_dilated(x, params['rw'][:, :, None], (1,),
                                           ((0, 0),),
                                           dimension_numbers=('NCH', 'OIH', 'NCH'),
                                           precision=hp)
        res = res + params['rb'][None, :, None]
    else:
        res = x                                                       # nn.Identity
    return h + res


def make_params(key, dim, dim_out, time_emb_dim, classes_emb_dim):
    ks = jax.random.split(key, 12)
    E = int(time_emb_dim) + int(classes_emb_dim)
    n = jax.random.normal
    p = {
        'mlp_w': 0.2 * n(ks[0], (2 * dim_out, E), jnp.float32),
        'mlp_b': 0.1 * n(ks[1], (2 * dim_out,), jnp.float32),
        'w1': 0.3 * n(ks[2], (dim_out, dim, 3), jnp.float32),
        'b1': 0.1 * n(ks[3], (dim_out,), jnp.float32),
        'g1w': 1.0 + 0.1 * n(ks[4], (dim_out,), jnp.float32),
        'g1b': 0.1 * n(ks[5], (dim_out,), jnp.float32),
        'w2': 0.3 * n(ks[6], (dim_out, dim_out, 3), jnp.float32),
        'b2': 0.1 * n(ks[7], (dim_out,), jnp.float32),
        'g2w': 1.0 + 0.1 * n(ks[8], (dim_out,), jnp.float32),
        'g2b': 0.1 * n(ks[9], (dim_out,), jnp.float32),
    }
    if dim != dim_out:   # nn.Conv1d(dim, dim_out, 1); nn.Identity otherwise
        p['rw'] = 0.3 * n(ks[10], (dim_out, dim), jnp.float32)
        p['rb'] = 0.1 * n(ks[11], (dim_out,), jnp.float32)
    return p


if __name__ == "__main__":
    L, groups = 128, 4
    time_emb_dim, classes_emb_dim = 8, 8

    key = jax.random.PRNGKey(0)
    kx, kt, kc, kp1, kp2, kp3 = jax.random.split(key, 6)

    def run_case(B, dim, dim_out, pkey, mxu_dtype, atol, rtol, with_cond=True):
        x = jax.random.normal(kx, (B, dim, L), jnp.float32)
        te = jax.random.normal(kt, (B, time_emb_dim), jnp.float32) if with_cond else None
        cl = jax.random.normal(kc, (B, classes_emb_dim), jnp.float32) if with_cond else None
        params = make_params(pkey, dim, dim_out, time_emb_dim, classes_emb_dim)
        out = resnet_block_pallas(x, te, cl, params, groups=groups,
                                  mxu_dtype=mxu_dtype)
        out = jax.block_until_ready(out)
        ref = ref_forward(x, te, cl, params, groups)
        assert out.shape == (B, dim_out, L), out.shape
        err = float(jnp.max(jnp.abs(out - ref)))
        assert jnp.allclose(out, ref, atol=atol, rtol=rtol), \
            (B, dim, dim_out, str(mxu_dtype), err)

    # 1) f32 MXU path, 1x1 residual conv, batch packing (bt=2, N=256)
    run_case(4, 8, 16, kp1, jnp.float32, 2e-2, 2e-2)
    # 2) bf16 MXU fast path, identity residual (dim == dim_out) -- loose check
    run_case(2, 16, 16, kp2, jnp.bfloat16, 1e-1, 1e-1)
    # 3) no conditioning embeddings, f32
    run_case(2, 8, 16, kp3, jnp.float32, 2e-2, 2e-2, with_cond=False)

    print("KERNEL_OK")
</pallas_src>

<mosaic_0001>
module attributes {stable_mosaic.version = 11 : i64} {
  func.func @_probe(%arg0: i32, %arg1: memref<8x128xf32, #tpu.memory_space<vmem>>, %arg2: memref<8x128xf32, #tpu.memory_space<vmem>>) attributes {dimension_semantics = [#tpu.dimension_semantics<arbitrary>], iteration_bounds = array<i64: 2>, scalar_prefetch = 0 : i64, scratch_operands = 0 : i64, tpu.core_type = #tpu.core_type<tc>, window_params = [{pipeline_mode = #tpu.pipeline_mode<synchronous>, transform_indices = @transform_0, window_bounds = array<i64: 8, 128>}, {pipeline_mode = #tpu.pipeline_mode<synchronous>, transform_indices = @transform_1, window_bounds = array<i64: 8, 128>}]} {
    %c0 = arith.constant 0 : index
    %c0_0 = arith.constant 0 : index
    %0 = vector.load %arg1[%c0, %c0_0] : memref<8x128xf32, #tpu.memory_space<vmem>>, vector<8x128xf32>
    %cst = arith.constant 1.000000e+00 : f32
    %1 = vector.broadcast %cst : f32 to vector<8x128xf32>
    %2 = arith.addf %0, %1 : vector<8x128xf32>
    %c0_1 = arith.constant 0 : index
    %c0_2 = arith.constant 0 : index
    %3 = vector.load %arg2[%c0_1, %c0_2] : memref<8x128xf32, #tpu.memory_space<vmem>>, vector<8x128xf32>
    tpu.vector_store %arg2[%c0_1, %c0_2], %2 {strides = array<i32>} : memref<8x128xf32, #tpu.memory_space<vmem>>, vector<8x128xf32>,
    return
  }
  func.func @transform_0(%arg0: i32) -> (i32, i32) {
    %c0_i32 = arith.constant 0 : i32
    %c0_i32_0 = arith.constant 0 : i32
    %c0_i32_1 = arith.constant 0 : i32
    return %c0_i32, %c0_i32_0 : i32, i32
  }
  func.func @transform_1(%arg0: i32) -> (i32, i32) {
    %c0_i32 = arith.constant 0 : i32
    %c0_i32_0 = arith.constant 0 : i32
    %c0_i32_1 = arith.constant 0 : i32
    return %c0_i32, %c0_i32_0 : i32, i32
  }
}

module attributes {stable_mosaic.version = 11 : i64} {
  func.func @_resnet_block_kernel(%arg0: i32, %arg1: memref<2x8x128xf32, #tpu.memory_space<vmem>>, %arg2: memref<2x16x1xf32, #tpu.memory_space<vmem>>, %arg3: memref<2x16x1xf32, #tpu.memory_space<vmem>>, %arg4: memref<3x16x8xf32, #tpu.memory_space<vmem>>, %arg5: memref<16x1xf32, #tpu.memory_space<vmem>>, %arg6: memref<16x1xf32, #tpu.memory_space<vmem>>, %arg7: memref<16x1xf32, #tpu.memory_space<vmem>>, %arg8: memref<3x16x16xf32, #tpu.memory_space<vmem>>, %arg9: memref<16x1xf32, #tpu.memory_space<vmem>>, %arg10: memref<16x1xf32, #tpu.memory_space<vmem>>, %arg11: memref<16x1xf32, #tpu.memory_space<vmem>>, %arg12: memref<16x16xf32, #tpu.memory_space<vmem>>, %arg13: memref<16x8xf32, #tpu.memory_space<vmem>>, %arg14: memref<16x1xf32, #tpu.memory_space<vmem>>, %arg15: memref<2x16x128xf32, #tpu.memory_space<vmem>>) attributes {dimension_semantics = [#tpu.dimension_semantics<parallel>], iteration_bounds = array<i64: 2>, scalar_prefetch = 0 : i64, scratch_operands = 0 : i64, tpu.core_type = #tpu.core_type<tc>, window_params = [{transform_indices = @transform_0, window_bounds = array<i64: 2, 8, 128>}, {transform_indices = @transform_1, window_bounds = array<i64: 2, 16, 1>}, {transform_indices = @transform_2, window_bounds = array<i64: 2, 16, 1>}, {pipeline_mode = #tpu.pipeline_mode<synchronous>, transform_indices = @transform_3, window_bounds = array<i64: 3, 16, 8>}, {pipeline_mode = #tpu.pipeline_mode<synchronous>, transform_indices = @transform_4, window_bounds = array<i64: 16, 1>}, {pipeline_mode = #tpu.pipeline_mode<synchronous>, transform_indices = @transform_5, window_bounds = array<i64: 16, 1>}, {pipeline_mode = #tpu.pipeline_mode<synchronous>, transform_indices = @transform_6, window_bounds = array<i64: 16, 1>}, {pipeline_mode = #tpu.pipeline_mode<synchronous>, transform_indices = @transform_7, window_bounds = array<i64: 3, 16, 16>}, {pipeline_mode = #tpu.pipeline_mode<synchronous>, transform_indices = @transform_8, window_bounds = array<i64: 16, 1>}, {pipeline_mode = #tpu.pipeline_mode<synchronous>, transform_indices = @transform_9, window_bounds = array<i64: 16, 1>}, {pipeline_mode = #tpu.pipeline_mode<synchronous>, transform_indices = @transform_10, window_bounds = array<i64: 16, 1>}, {pipeline_mode = #tpu.pipeline_mode<synchronous>, transform_indices = @transform_11, window_bounds = array<i64: 16, 16>}, {pipeline_mode = #tpu.pipeline_mode<synchronous>, transform_indices = @transform_12, window_bounds = array<i64: 16, 8>}, {pipeline_mode = #tpu.pipeline_mode<synchronous>, transform_indices = @transform_13, window_bounds = array<i64: 16, 1>}, {transform_indices = @transform_14, window_bounds = array<i64: 2, 16, 128>}]} {
    %c0 = arith.constant 0 : index
    %c0_0 = arith.constant 0 : index
    %c0_1 = arith.constant 0 : index
    %0 = vector.load %arg1[%c0, %c0_0, %c0_1] : memref<2x8x128xf32, #tpu.memory_space<vmem>>, vector<1x8x128xf32>
    %1 = vector.shape_cast %0 : vector<1x8x128xf32> to vector<8x128xf32>
    %c1 = arith.constant 1 : index
    %c0_2 = arith.constant 0 : index
    %c0_3 = arith.constant 0 : index
    %2 = vector.load %arg1[%c1, %c0_2, %c0_3] : memref<2x8x128xf32, #tpu.memory_space<vmem>>, vector<1x8x128xf32>
    %3 = vector.shape_cast %2 : vector<1x8x128xf32> to vector<8x128xf32>
    %4 = tpu.concatenate %1, %3 in 1 : vector<8x128xf32>, vector<8x128xf32> -> vector<8x256xf32>
    %c0_4 = arith.constant 0 : index
    %c0_5 = arith.constant 0 : index
    %5 = vector.load %arg12[%c0_4, %c0_5] : memref<16x16xf32, #tpu.memory_space<vmem>>, vector<16x16xf32>
    %6 = tpu.iota {dimensions = array<i32: 1>} : vector<8x256xi32>
    %c128_i32 = arith.constant 128 : i32
    %c0_i32 = arith.constant 0 : i32
    %7 = arith.cmpi eq, %c128_i32, %c0_i32 : i32
    %c1_i32 = arith.constant 1 : i32
    %8 = arith.select %7, %c1_i32, %c128_i32 : i32
    %9 = vector.broadcast %8 : i32 to vector<8x256xi32>
    %10 = arith.remsi %6, %9 : vector<8x256xi32>
    %c0_i32_6 = arith.constant 0 : i32
    %11 = vector.broadcast %c0_i32_6 : i32 to vector<8x256xi32>
    %12 = arith.cmpi ne, %10, %11 : vector<8x256xi32>
    %c0_i32_7 = arith.constant 0 : i32
    %13 = vector.broadcast %c0_i32_7 : i32 to vector<8x256xi32>
    %14 = arith.cmpi slt, %10, %13 : vector<8x256xi32>
    %c0_i32_8 = arith.constant 0 : i32
    %15 = arith.cmpi slt, %8, %c0_i32_8 : i32
    %16 = vector.broadcast %15 : i1 to vector<8x256xi1>
    %17 = vector.broadcast %16 : vector<8x256xi1> to vector<8x256xi1>
    %18 = arith.xori %14, %17 : vector<8x256xi1>
    %19 = arith.andi %18, %12 : vector<8x256xi1>
    %20 = vector.broadcast %8 : i32 to vector<8x256xi32>
    %21 = arith.addi %10, %20 : vector<8x256xi32>
    %22 = arith.select %19, %21, %10 : vector<8x256xi1>, vector<8x256xi32>
    %c127_i32 = arith.constant 127 : i32
    %23 = vector.broadcast %c127_i32 : i32 to vector<8x256xi32>
    %24 = arith.cmpi eq, %22, %23 : vector<8x256xi32>
    %cst = arith.constant 0.000000e+00 : f32
    %25 = vector.broadcast %cst : f32 to vector<8x256xf32>
    %26 = arith.select %24, %25, %4 : vector<8x256xi1>, vector<8x256xf32>
    %c1_i32_9 = arith.constant 1 : i32
    %27 = tpu.dynamic_rotate %26 by %c1_i32_9 dim 1 : vector<8x256xf32>, i32 -> vector<8x256xf32>
    %c128_i32_10 = arith.constant 128 : i32
    %c0_i32_11 = arith.constant 0 : i32
    %28 = arith.cmpi eq, %c128_i32_10, %c0_i32_11 : i32
    %c1_i32_12 = arith.constant 1 : i32
    %29 = arith.select %28, %c1_i32_12, %c128_i32_10 : i32
    %30 = vector.broadcast %29 : i32 to vector<8x256xi32>
    %31 = arith.remsi %6, %30 : vector<8x256xi32>
    %c0_i32_13 = arith.constant 0 : i32
    %32 = vector.broadcast %c0_i32_13 : i32 to vector<8x256xi32>
    %33 = arith.cmpi ne, %31, %32 : vector<8x256xi32>
    %c0_i32_14 = arith.constant 0 : i32
    %34 = vector.broadcast %c0_i32_14 : i32 to vector<8x256xi32>
    %35 = arith.cmpi slt, %31, %34 : vector<8x256xi32>
    %c0_i32_15 = arith.constant 0 : i32
    %36 = arith.cmpi slt, %29, %c0_i32_15 : i32
    %37 = vector.broadcast %36 : i1 to vector<8x256xi1>
    %38 = vector.broadcast %37 : vector<8x256xi1> to vector<8x256xi1>
    %39 = arith.xori %35, %38 : vector<8x256xi1>
    %40 = arith.andi %39, %33 : vector<8x256xi1>
    %41 = vector.broadcast %29 : i32 to vector<8x256xi32>
    %42 = arith.addi %31, %41 : vector<8x256xi32>
    %43 = arith.select %40, %42, %31 : vector<8x256xi1>, vector<8x256xi32>
    %c0_i32_16 = arith.constant 0 : i32
    %44 = vector.broadcast %c0_i32_16 : i32 to vector<8x256xi32>
    %45 = arith.cmpi eq, %43, %44 : vector<8x256xi32>
    %cst_17 = arith.constant 0.000000e+00 : f32
    %46 = vector.broadcast %cst_17 : f32 to vector<8x256xf32>
    %47 = arith.select %45, %46, %4 : vector<8x256xi1>, vector<8x256xf32>
    %c255_i32 = arith.constant 255 : i32
    %48 = tpu.dynamic_rotate %47 by %c255_i32 dim 1 : vector<8x256xf32>, i32 -> vector<8x256xf32>
    %c0_18 = arith.constant 0 : index
    %c0_19 = arith.constant 0 : index
    %c0_20 = arith.constant 0 : index
    %49 = vector.load %arg4[%c0_18, %c0_19, %c0_20] : memref<3x16x8xf32, #tpu.memory_space<vmem>>, vector<1x16x8xf32>
    %50 = vector.shape_cast %49 : vector<1x16x8xf32> to vector<16x8xf32>
    %cst_21 = arith.constant dense<0.000000e+00> : vector<16x256xf32>
    %51 = tpu.matmul %50, %27, %cst_21 {dimension_numbers = #tpu.dot_dimension_numbers<[1], [0], [0], [1], [0, 0, 1, 1], [], []>} : vector<16x8xf32>, vector<8x256xf32>, vector<16x256xf32> -> vector<16x256xf32>
    %c1_22 = arith.constant 1 : index
    %c0_23 = arith.constant 0 : index
    %c0_24 = arith.constant 0 : index
    %52 = vector.load %arg4[%c1_22, %c0_23, %c0_24] : memref<3x16x8xf32, #tpu.memory_space<vmem>>, vector<1x16x8xf32>
    %53 = vector.shape_cast %52 : vector<1x16x8xf32> to vector<16x8xf32>
    %cst_25 = arith.constant dense<0.000000e+00> : vector<16x256xf32>
    %54 = tpu.matmul %53, %4, %cst_25 {dimension_numbers = #tpu.dot_dimension_numbers<[1], [0], [0], [1], [0, 0, 1, 1], [], []>} : vector<16x8xf32>, vector<8x256xf32>, vector<16x256xf32> -> vector<16x256xf32>
    %55 = arith.addf %51, %54 : vector<16x256xf32>
    %c2 = arith.constant 2 : index
    %c0_26 = arith.constant 0 : index
    %c0_27 = arith.constant 0 : index
    %56 = vector.load %arg4[%c2, %c0_26, %c0_27] : memref<3x16x8xf32, #tpu.memory_space<vmem>>, vector<1x16x8xf32>
    %57 = vector.shape_cast %56 : vector<1x16x8xf32> to vector<16x8xf32>
    %cst_28 = arith.constant dense<0.000000e+00> : vector<16x256xf32>
    %58 = tpu.matmul %57, %48, %cst_28 {dimension_numbers = #tpu.dot_dimension_numbers<[1], [0], [0], [1], [0, 0, 1, 1], [], []>} : vector<16x8xf32>, vector<8x256xf32>, vector<16x256xf32> -> vector<16x256xf32>
    %59 = arith.addf %55, %58 : vector<16x256xf32>
    %c0_29 = arith.constant 0 : index
    %c0_30 = arith.constant 0 : index
    %60 = vector.load %arg5[%c0_29, %c0_30] : memref<16x1xf32, #tpu.memory_space<vmem>>, vector<16x1xf32>
    %61 = vector.broadcast %60 : vector<16x1xf32> to vector<16x256xf32>
    %62 = arith.addf %59, %61 : vector<16x256xf32>
    %c0_31 = arith.constant 0 : index
    %c0_32 = arith.constant 0 : index
    %63 = vector.load %arg6[%c0_31, %c0_32] : memref<16x1xf32, #tpu.memory_space<vmem>>, vector<16x1xf32>
    %c0_33 = arith.constant 0 : index
    %c0_34 = arith.constant 0 : index
    %64 = vector.load %arg7[%c0_33, %c0_34] : memref<16x1xf32, #tpu.memory_space<vmem>>, vector<16x1xf32>
    %65 = vector.extract_strided_slice %62 {offsets = [0, 0], sizes = [16, 128], strides = [1, 1]} : vector<16x256xf32> to vector<16x128xf32>
    %cst_35 = arith.constant dense<0.000000e+00> : vector<16xf32>
    %66 = vector.multi_reduction <add>, %65, %cst_35 [1] : vector<16x128xf32> to vector<16xf32>
    %67 = vector.shape_cast %66 : vector<16xf32> to vector<16x1xf32>
    %cst_36 = arith.constant dense<0.000000e+00> : vector<16x1xf32>
    %68 = tpu.matmul %5, %67, %cst_36 {dimension_numbers = #tpu.dot_dimension_numbers<[1], [0], [0], [1], [0, 0, 1, 1], [], []>} : vector<16x16xf32>, vector<16x1xf32>, vector<16x1xf32> -> vector<16x1xf32>
    %69 = vector.broadcast %68 : vector<16x1xf32> to vector<16x128xf32>
    %70 = arith.subf %65, %69 : vector<16x128xf32>
    %71 = arith.mulf %70, %70 : vector<16x128xf32>
    %cst_37 = arith.constant dense<0.000000e+00> : vector<16xf32>
    %72 = vector.multi_reduction <add>, %71, %cst_37 [1] : vector<16x128xf32> to vector<16xf32>
    %73 = vector.shape_cast %72 : vector<16xf32> to vector<16x1xf32>
    %cst_38 = arith.constant dense<0.000000e+00> : vector<16x1xf32>
    %74 = tpu.matmul %5, %73, %cst_38 {dimension_numbers = #tpu.dot_dimension_numbers<[1], [0], [0], [1], [0, 0, 1, 1], [], []>} : vector<16x16xf32>, vector<16x1xf32>, vector<16x1xf32> -> vector<16x1xf32>
    %cst_39 = arith.constant 9.99999974E-6 : f32
    %75 = vector.broadcast %cst_39 : f32 to vector<16x1xf32>
    %76 = arith.addf %74, %75 : vector<16x1xf32>
    %77 = math.rsqrt %76 : vector<16x1xf32>
    %78 = vector.broadcast %77 : vector<16x1xf32> to vector<16x128xf32>
    %79 = arith.mulf %70, %78 : vector<16x128xf32>
    %80 = vector.broadcast %63 : vector<16x1xf32> to vector<16x128xf32>
    %81 = arith.mulf %79, %80 : vector<16x128xf32>
    %82 = vector.broadcast %64 : vector<16x1xf32> to vector<16x128xf32>
    %83 = arith.addf %81, %82 : vector<16x128xf32>
    %c0_40 = arith.constant 0 : index
    %c0_41 = arith.constant 0 : index
    %c0_42 = arith.constant 0 : index
    %84 = vector.load %arg2[%c0_40, %c0_41, %c0_42] : memref<2x16x1xf32, #tpu.memory_space<vmem>>, vector<1x16x1xf32>
    %85 = vector.shape_cast %84 : vector<1x16x1xf32> to vector<16x1xf32>
    %cst_43 = arith.constant 1.000000e+00 : f32
    %86 = vector.broadcast %cst_43 : f32 to vector<16x1xf32>
    %87 = arith.addf %85, %86 : vector<16x1xf32>
    %88 = vector.broadcast %87 : vector<16x1xf32> to vector<16x128xf32>
    %89 = arith.mulf %83, %88 : vector<16x128xf32>
    %c0_44 = arith.constant 0 : index
    %c0_45 = arith.constant 0 : index
    %c0_46 = arith.constant 0 : index
    %90 = vector.load %arg3[%c0_44, %c0_45, %c0_46] : memref<2x16x1xf32, #tpu.memory_space<vmem>>, vector<1x16x1xf32>
    %91 = vector.shape_cast %90 : vector<1x16x1xf32> to vector<16x1xf32>
    %92 = vector.broadcast %91 : vector<16x1xf32> to vector<16x128xf32>
    %93 = arith.addf %89, %92 : vector<16x128xf32>
    %94 = arith.negf %93 : vector<16x128xf32>
    %95 = math.exp %94 : vector<16x128xf32>
    %cst_47 = arith.constant 1.000000e+00 : f32
    %96 = vector.broadcast %cst_47 : f32 to vector<16x128xf32>
    %97 = arith.addf %96, %95 : vector<16x128xf32>
    %98 = arith.divf %96, %97 : vector<16x128xf32>
    %99 = arith.mulf %93, %98 : vector<16x128xf32>
    %100 = vector.extract_strided_slice %62 {offsets = [0, 128], sizes = [16, 128], strides = [1, 1]} : vector<16x256xf32> to vector<16x128xf32>
    %cst_48 = arith.constant dense<0.000000e+00> : vector<16xf32>
    %101 = vector.multi_reduction <add>, %100, %cst_48 [1] : vector<16x128xf32> to vector<16xf32>
    %102 = vector.shape_cast %101 : vector<16xf32> to vector<16x1xf32>
    %cst_49 = arith.constant dense<0.000000e+00> : vector<16x1xf32>
    %103 = tpu.matmul %5, %102, %cst_49 {dimension_numbers = #tpu.dot_dimension_numbers<[1], [0], [0], [1], [0, 0, 1, 1], [], []>} : vector<16x16xf32>, vector<16x1xf32>, vector<16x1xf32> -> vector<16x1xf32>
    %104 = vector.broadcast %103 : vector<16x1xf32> to vector<16x128xf32>
    %105 = arith.subf %100, %104 : vector<16x128xf32>
    %106 = arith.mulf %105, %105 : vector<16x128xf32>
    %cst_50 = arith.constant dense<0.000000e+00> : vector<16xf32>
    %107 = vector.multi_reduction <add>, %106, %cst_50 [1] : vector<16x128xf32> to vector<16xf32>
    %108 = vector.shape_cast %107 : vector<16xf32> to vector<16x1xf32>
    %cst_51 = arith.constant dense<0.000000e+00> : vector<16x1xf32>
    %109 = tpu.matmul %5, %108, %cst_51 {dimension_numbers = #tpu.dot_dimension_numbers<[1], [0], [0], [1], [0, 0, 1, 1], [], []>} : vector<16x16xf32>, vector<16x1xf32>, vector<16x1xf32> -> vector<16x1xf32>
    %cst_52 = arith.constant 9.99999974E-6 : f32
    %110 = vector.broadcast %cst_52 : f32 to vector<16x1xf32>
    %111 = arith.addf %109, %110 : vector<16x1xf32>
    %112 = math.rsqrt %111 : vector<16x1xf32>
    %113 = vector.broadcast %112 : vector<16x1xf32> to vector<16x128xf32>
    %114 = arith.mulf %105, %113 : vector<16x128xf32>
    %115 = vector.broadcast %63 : vector<16x1xf32> to vector<16x128xf32>
    %116 = arith.mulf %114, %115 : vector<16x128xf32>
    %117 = vector.broadcast %64 : vector<16x1xf32> to vector<16x128xf32>
    %118 = arith.addf %116, %117 : vector<16x128xf32>
    %c1_53 = arith.constant 1 : index
    %c0_54 = arith.constant 0 : index
    %c0_55 = arith.constant 0 : index
    %119 = vector.load %arg2[%c1_53, %c0_54, %c0_55] : memref<2x16x1xf32, #tpu.memory_space<vmem>>, vector<1x16x1xf32>
    %120 = vector.shape_cast %119 : vector<1x16x1xf32> to vector<16x1xf32>
    %cst_56 = arith.constant 1.000000e+00 : f32
    %121 = vector.broadcast %cst_56 : f32 to vector<16x1xf32>
    %122 = arith.addf %120, %121 : vector<16x1xf32>
    %123 = vector.broadcast %122 : vector<16x1xf32> to vector<16x128xf32>
    %124 = arith.mulf %118, %123 : vector<16x128xf32>
    %c1_57 = arith.constant 1 : index
    %c0_58 = arith.constant 0 : index
    %c0_59 = arith.constant 0 : index
    %125 = vector.load %arg3[%c1_57, %c0_58, %c0_59] : memref<2x16x1xf32, #tpu.memory_space<vmem>>, vector<1x16x1xf32>
    %126 = vector.shape_cast %125 : vector<1x16x1xf32> to vector<16x1xf32>
    %127 = vector.broadcast %126 : vector<16x1xf32> to vector<16x128xf32>
    %128 = arith.addf %124, %127 : vector<16x128xf32>
    %129 = arith.negf %128 : vector<16x128xf32>
    %130 = math.exp %129 : vector<16x128xf32>
    %cst_60 = arith.constant 1.000000e+00 : f32
    %131 = vector.broadcast %cst_60 : f32 to vector<16x128xf32>
    %132 = arith.addf %131, %130 : vector<16x128xf32>
    %133 = arith.divf %131, %132 : vector<16x128xf32>
    %134 = arith.mulf %128, %133 : vector<16x128xf32>
    %135 = tpu.concatenate %99, %134 in 1 : vector<16x128xf32>, vector<16x128xf32> -> vector<16x256xf32>
    %136 = tpu.iota {dimensions = array<i32: 1>} : vector<16x256xi32>
    %c128_i32_61 = arith.constant 128 : i32
    %c0_i32_62 = arith.constant 0 : i32
    %137 = arith.cmpi eq, %c128_i32_61, %c0_i32_62 : i32
    %c1_i32_63 = arith.constant 1 : i32
    %138 = arith.select %137, %c1_i32_63, %c128_i32_61 : i32
    %139 = vector.broadcast %138 : i32 to vector<16x256xi32>
    %140 = arith.remsi %136, %139 : vector<16x256xi32>
    %c0_i32_64 = arith.constant 0 : i32
    %141 = vector.broadcast %c0_i32_64 : i32 to vector<16x256xi32>
    %142 = arith.cmpi ne, %140, %141 : vector<16x256xi32>
    %c0_i32_65 = arith.constant 0 : i32
    %143 = vector.broadcast %c0_i32_65 : i32 to vector<16x256xi32>
    %144 = arith.cmpi slt, %140, %143 : vector<16x256xi32>
    %c0_i32_66 = arith.constant 0 : i32
    %145 = arith.cmpi slt, %138, %c0_i32_66 : i32
    %146 = vector.broadcast %145 : i1 to vector<16x256xi1>
    %147 = vector.broadcast %146 : vector<16x256xi1> to vector<16x256xi1>
    %148 = arith.xori %144, %147 : vector<16x256xi1>
    %149 = arith.andi %148, %142 : vector<16x256xi1>
    %150 = vector.broadcast %138 : i32 to vector<16x256xi32>
    %151 = arith.addi %140, %150 : vector<16x256xi32>
    %152 = arith.select %149, %151, %140 : vector<16x256xi1>, vector<16x256xi32>
    %c127_i32_67 = arith.constant 127 : i32
    %153 = vector.broadcast %c127_i32_67 : i32 to vector<16x256xi32>
    %154 = arith.cmpi eq, %152, %153 : vector<16x256xi32>
    %cst_68 = arith.constant 0.000000e+00 : f32
    %155 = vector.broadcast %cst_68 : f32 to vector<16x256xf32>
    %156 = arith.select %154, %155, %135 : vector<16x256xi1>, vector<16x256xf32>
    %c1_i32_69 = arith.constant 1 : i32
    %157 = tpu.dynamic_rotate %156 by %c1_i32_69 dim 1 : vector<16x256xf32>, i32 -> vector<16x256xf32>
    %c128_i32_70 = arith.constant 128 : i32
    %c0_i32_71 = arith.constant 0 : i32
    %158 = arith.cmpi eq, %c128_i32_70, %c0_i32_71 : i32
    %c1_i32_72 = arith.constant 1 : i32
    %159 = arith.select %158, %c1_i32_72, %c128_i32_70 : i32
    %160 = vector.broadcast %159 : i32 to vector<16x256xi32>
    %161 = arith.remsi %136, %160 : vector<16x256xi32>
    %c0_i32_73 = arith.constant 0 : i32
    %162 = vector.broadcast %c0_i32_73 : i32 to vector<16x256xi32>
    %163 = arith.cmpi ne, %161, %162 : vector<16x256xi32>
    %c0_i32_74 = arith.constant 0 : i32
    %164 = vector.broadcast %c0_i32_74 : i32 to vector<16x256xi32>
    %165 = arith.cmpi slt, %161, %164 : vector<16x256xi32>
    %c0_i32_75 = arith.constant 0 : i32
    %166 = arith.cmpi slt, %159, %c0_i32_75 : i32
    %167 = vector.broadcast %166 : i1 to vector<16x256xi1>
    %168 = vector.broadcast %167 : vector<16x256xi1> to vector<16x256xi1>
    %169 = arith.xori %165, %168 : vector<16x256xi1>
    %170 = arith.andi %169, %163 : vector<16x256xi1>
    %171 = vector.broadcast %159 : i32 to vector<16x256xi32>
    %172 = arith.addi %161, %171 : vector<16x256xi32>
    %173 = arith.select %170, %172, %161 : vector<16x256xi1>, vector<16x256xi32>
    %c0_i32_76 = arith.constant 0 : i32
    %174 = vector.broadcast %c0_i32_76 : i32 to vector<16x256xi32>
    %175 = arith.cmpi eq, %173, %174 : vector<16x256xi32>
    %cst_77 = arith.constant 0.000000e+00 : f32
    %176 = vector.broadcast %cst_77 : f32 to vector<16x256xf32>
    %177 = arith.select %175, %176, %135 : vector<16x256xi1>, vector<16x256xf32>
    %c255_i32_78 = arith.constant 255 : i32
    %178 = tpu.dynamic_rotate %177 by %c255_i32_78 dim 1 : vector<16x256xf32>, i32 -> vector<16x256xf32>
    %c0_79 = arith.constant 0 : index
    %c0_80 = arith.constant 0 : index
    %c0_81 = arith.constant 0 : index
    %179 = vector.load %arg8[%c0_79, %c0_80, %c0_81] : memref<3x16x16xf32, #tpu.memory_space<vmem>>, vector<1x16x16xf32>
    %180 = vector.shape_cast %179 : vector<1x16x16xf32> to vector<16x16xf32>
    %cst_82 = arith.constant dense<0.000000e+00> : vector<16x256xf32>
    %181 = tpu.matmul %180, %157, %cst_82 {dimension_numbers = #tpu.dot_dimension_numbers<[1], [0], [0], [1], [0, 0, 1, 1], [], []>} : vector<16x16xf32>, vector<16x256xf32>, vector<16x256xf32> -> vector<16x256xf32>
    %c1_83 = arith.constant 1 : index
    %c0_84 = arith.constant 0 : index
    %c0_85 = arith.constant 0 : index
    %182 = vector.load %arg8[%c1_83, %c0_84, %c0_85] : memref<3x16x16xf32, #tpu.memory_space<vmem>>, vector<1x16x16xf32>
    %183 = vector.shape_cast %182 : vector<1x16x16xf32> to vector<16x16xf32>
    %cst_86 = arith.constant dense<0.000000e+00> : vector<16x256xf32>
    %184 = tpu.matmul %183, %135, %cst_86 {dimension_numbers = #tpu.dot_dimension_numbers<[1], [0], [0], [1], [0, 0, 1, 1], [], []>} : vector<16x16xf32>, vector<16x256xf32>, vector<16x256xf32> -> vector<16x256xf32>
    %185 = arith.addf %181, %184 : vector<16x256xf32>
    %c2_87 = arith.constant 2 : index
    %c0_88 = arith.constant 0 : index
    %c0_89 = arith.constant 0 : index
    %186 = vector.load %arg8[%c2_87, %c0_88, %c0_89] : memref<3x16x16xf32, #tpu.memory_space<vmem>>, vector<1x16x16xf32>
    %187 = vector.shape_cast %186 : vector<1x16x16xf32> to vector<16x16xf32>
    %cst_90 = arith.constant dense<0.000000e+00> : vector<16x256xf32>
    %188 = tpu.matmul %187, %178, %cst_90 {dimension_numbers = #tpu.dot_dimension_numbers<[1], [0], [0], [1], [0, 0, 1, 1], [], []>} : vector<16x16xf32>, vector<16x256xf32>, vector<16x256xf32> -> vector<16x256xf32>
    %189 = arith.addf %185, %188 : vector<16x256xf32>
    %c0_91 = arith.constant 0 : index
    %c0_92 = arith.constant 0 : index
    %190 = vector.load %arg9[%c0_91, %c0_92] : memref<16x1xf32, #tpu.memory_space<vmem>>, vector<16x1xf32>
    %191 = vector.broadcast %190 : vector<16x1xf32> to vector<16x256xf32>
    %192 = arith.addf %189, %191 : vector<16x256xf32>
    %c0_93 = arith.constant 0 : index
    %c0_94 = arith.constant 0 : index
    %193 = vector.load %arg10[%c0_93, %c0_94] : memref<16x1xf32, #tpu.memory_space<vmem>>, vector<16x1xf32>
    %c0_95 = arith.constant 0 : index
    %c0_96 = arith.constant 0 : index
    %194 = vector.load %arg11[%c0_95, %c0_96] : memref<16x1xf32, #tpu.memory_space<vmem>>, vector<16x1xf32>
    %195 = vector.extract_strided_slice %192 {offsets = [0, 0], sizes = [16, 128], strides = [1, 1]} : vector<16x256xf32> to vector<16x128xf32>
    %cst_97 = arith.constant dense<0.000000e+00> : vector<16xf32>
    %196 = vector.multi_reduction <add>, %195, %cst_97 [1] : vector<16x128xf32> to vector<16xf32>
    %197 = vector.shape_cast %196 : vector<16xf32> to vector<16x1xf32>
    %cst_98 = arith.constant dense<0.000000e+00> : vector<16x1xf32>
    %198 = tpu.matmul %5, %197, %cst_98 {dimension_numbers = #tpu.dot_dimension_numbers<[1], [0], [0], [1], [0, 0, 1, 1], [], []>} : vector<16x16xf32>, vector<16x1xf32>, vector<16x1xf32> -> vector<16x1xf32>
    %199 = vector.broadcast %198 : vector<16x1xf32> to vector<16x128xf32>
    %200 = arith.subf %195, %199 : vector<16x128xf32>
    %201 = arith.mulf %200, %200 : vector<16x128xf32>
    %cst_99 = arith.constant dense<0.000000e+00> : vector<16xf32>
    %202 = vector.multi_reduction <add>, %201, %cst_99 [1] : vector<16x128xf32> to vector<16xf32>
    %203 = vector.shape_cast %202 : vector<16xf32> to vector<16x1xf32>
    %cst_100 = arith.constant dense<0.000000e+00> : vector<16x1xf32>
    %204 = tpu.matmul %5, %203, %cst_100 {dimension_numbers = #tpu.dot_dimension_numbers<[1], [0], [0], [1], [0, 0, 1, 1], [], []>} : vector<16x16xf32>, vector<16x1xf32>, vector<16x1xf32> -> vector<16x1xf32>
    %cst_101 = arith.constant 9.99999974E-6 : f32
    %205 = vector.broadcast %cst_101 : f32 to vector<16x1xf32>
    %206 = arith.addf %204, %205 : vector<16x1xf32>
    %207 = math.rsqrt %206 : vector<16x1xf32>
    %208 = vector.broadcast %207 : vector<16x1xf32> to vector<16x128xf32>
    %209 = arith.mulf %200, %208 : vector<16x128xf32>
    %210 = vector.broadcast %193 : vector<16x1xf32> to vector<16x128xf32>
    %211 = arith.mulf %209, %210 : vector<16x128xf32>
    %212 = vector.broadcast %194 : vector<16x1xf32> to vector<16x128xf32>
    %213 = arith.addf %211, %212 : vector<16x128xf32>
    %214 = arith.negf %213 : vector<16x128xf32>
    %215 = math.exp %214 : vector<16x128xf32>
    %cst_102 = arith.constant 1.000000e+00 : f32
    %216 = vector.broadcast %cst_102 : f32 to vector<16x128xf32>
    %217 = arith.addf %216, %215 : vector<16x128xf32>
    %218 = arith.divf %216, %217 : vector<16x128xf32>
    %219 = arith.mulf %213, %218 : vector<16x128xf32>
    %220 = vector.extract_strided_slice %192 {offsets = [0, 128], sizes = [16, 128], strides = [1, 1]} : vector<16x256xf32> to vector<16x128xf32>
    %cst_103 = arith.constant dense<0.000000e+00> : vector<16xf32>
    %221 = vector.multi_reduction <add>, %220, %cst_103 [1] : vector<16x128xf32> to vector<16xf32>
    %222 = vector.shape_cast %221 : vector<16xf32> to vector<16x1xf32>
    %cst_104 = arith.constant dense<0.000000e+00> : vector<16x1xf32>
    %223 = tpu.matmul %5, %222, %cst_104 {dimension_numbers = #tpu.dot_dimension_numbers<[1], [0], [0], [1], [0, 0, 1, 1], [], []>} : vector<16x16xf32>, vector<16x1xf32>, vector<16x1xf32> -> vector<16x1xf32>
    %224 = vector.broadcast %223 : vector<16x1xf32> to vector<16x128xf32>
    %225 = arith.subf %220, %224 : vector<16x128xf32>
    %226 = arith.mulf %225, %225 : vector<16x128xf32>
    %cst_105 = arith.constant dense<0.000000e+00> : vector<16xf32>
    %227 = vector.multi_reduction <add>, %226, %cst_105 [1] : vector<16x128xf32> to vector<16xf32>
    %228 = vector.shape_cast %227 : vector<16xf32> to vector<16x1xf32>
    %cst_106 = arith.constant dense<0.000000e+00> : vector<16x1xf32>
    %229 = tpu.matmul %5, %228, %cst_106 {dimension_numbers = #tpu.dot_dimension_numbers<[1], [0], [0], [1], [0, 0, 1, 1], [], []>} : vector<16x16xf32>, vector<16x1xf32>, vector<16x1xf32> -> vector<16x1xf32>
    %cst_107 = arith.constant 9.99999974E-6 : f32
    %230 = vector.broadcast %cst_107 : f32 to vector<16x1xf32>
    %231 = arith.addf %229, %230 : vector<16x1xf32>
    %232 = math.rsqrt %231 : vector<16x1xf32>
    %233 = vector.broadcast %232 : vector<16x1xf32> to vector<16x128xf32>
    %234 = arith.mulf %225, %233 : vector<16x128xf32>
    %235 = vector.broadcast %193 : vector<16x1xf32> to vector<16x128xf32>
    %236 = arith.mulf %234, %235 : vector<16x128xf32>
    %237 = vector.broadcast %194 : vector<16x1xf32> to vector<16x128xf32>
    %238 = arith.addf %236, %237 : vector<16x128xf32>
    %239 = arith.negf %238 : vector<16x128xf32>
    %240 = math.exp %239 : vector<16x128xf32>
    %cst_108 = arith.constant 1.000000e+00 : f32
    %241 = vector.broadcast %cst_108 : f32 to vector<16x128xf32>
    %242 = arith.addf %241, %240 : vector<16x128xf32>
    %243 = arith.divf %241, %242 : vector<16x128xf32>
    %244 = arith.mulf %238, %243 : vector<16x128xf32>
    %245 = tpu.concatenate %219, %244 in 1 : vector<16x128xf32>, vector<16x128xf32> -> vector<16x256xf32>
    %c0_109 = arith.constant 0 : index
    %c0_110 = arith.constant 0 : index
    %246 = vector.load %arg13[%c0_109, %c0_110] : memref<16x8xf32, #tpu.memory_space<vmem>>, vector<16x8xf32>
    %cst_111 = arith.constant dense<0.000000e+00> : vector<16x256xf32>
    %247 = tpu.matmul %246, %4, %cst_111 {dimension_numbers = #tpu.dot_dimension_numbers<[1], [0], [0], [1], [0, 0, 1, 1], [], []>} : vector<16x8xf32>, vector<8x256xf32>, vector<16x256xf32> -> vector<16x256xf32>
    %c0_112 = arith.constant 0 : index
    %c0_113 = arith.constant 0 : index
    %248 = vector.load %arg14[%c0_112, %c0_113] : memref<16x1xf32, #tpu.memory_space<vmem>>, vector<16x1xf32>
    %249 = vector.broadcast %248 : vector<16x1xf32> to vector<16x256xf32>
    %250 = arith.addf %247, %249 : vector<16x256xf32>
    %251 = arith.addf %245, %250 : vector<16x256xf32>
    %252 = vector.extract_strided_slice %251 {offsets = [0, 0], sizes = [16, 128], strides = [1, 1]} : vector<16x256xf32> to vector<16x128xf32>
    %c0_114 = arith.constant 0 : index
    %c0_115 = arith.constant 0 : index
    %c0_116 = arith.constant 0 : index
    %253 = vector.load %arg15[%c0_114, %c0_115, %c0_116] : memref<2x16x128xf32, #tpu.memory_space<vmem>>, vector<1x16x128xf32>
    %254 = vector.shape_cast %253 : vector<1x16x128xf32> to vector<16x128xf32>
    %255 = vector.shape_cast %252 : vector<16x128xf32> to vector<1x16x128xf32>
    tpu.vector_store %arg15[%c0_114, %c0_115, %c0_116], %255 {strides = array<i32>} : memref<2x16x128xf32, #tpu.memory_space<vmem>>, vector<1x16x128xf32>,
    %256 = vector.extract_strided_slice %251 {offsets = [0, 128], sizes = [16, 128], strides = [1, 1]} : vector<16x256xf32> to vector<16x128xf32>
    %c1_117 = arith.constant 1 : index
    %c0_118 = arith.constant 0 : index
    %c0_119 = arith.constant 0 : index
    %257 = vector.load %arg15[%c1_117, %c0_118, %c0_119] : memref<2x16x128xf32, #tpu.memory_space<vmem>>, vector<1x16x128xf32>
    %258 = vector.shape_cast %257 : vector<1x16x128xf32> to vector<16x128xf32>
    %259 = vector.shape_cast %256 : vector<16x128xf32> to vector<1x16x128xf32>
    tpu.vector_store %arg15[%c1_117, %c0_118, %c0_119], %259 {strides = array<i32>} : memref<2x16x128xf32, #tpu.memory_space<vmem>>, vector<1x16x128xf32>,
    return
  }
  func.func @transform_0(%arg0: i32) -> (i32, i32, i32) {
    %c0_i32 = arith.constant 0 : i32
    %c0_i32_0 = arith.constant 0 : i32
    %c0_i32_1 = arith.constant 0 : i32
    return %arg0, %c0_i32, %c0_i32_0 : i32, i32, i32
  }
  func.func @transform_1(%arg0: i32) -> (i32, i32, i32) {
    %c0_i32 = arith.constant 0 : i32
    %c0_i32_0 = arith.constant 0 : i32
    %c0_i32_1 = arith.constant 0 : i32
    return %arg0, %c0_i32, %c0_i32_0 : i32, i32, i32
  }
  func.func @transform_2(%arg0: i32) -> (i32, i32, i32) {
    %c0_i32 = arith.constant 0 : i32
    %c0_i32_0 = arith.constant 0 : i32
    %c0_i32_1 = arith.constant 0 : i32
    return %arg0, %c0_i32, %c0_i32_0 : i32, i32, i32
  }
  func.func @transform_3(%arg0: i32) -> (i32, i32, i32) {
    %c0_i32 = arith.constant 0 : i32
    %c0_i32_0 = arith.constant 0 : i32
    %c0_i32_1 = arith.constant 0 : i32
    %c0_i32_2 = arith.constant 0 : i32
    return %c0_i32, %c0_i32_0, %c0_i32_1 : i32, i32, i32
  }
  func.func @transform_4(%arg0: i32) -> (i32, i32) {
    %c0_i32 = arith.constant 0 : i32
    %c0_i32_0 = arith.constant 0 : i32
    %c0_i32_1 = arith.constant 0 : i32
    return %c0_i32, %c0_i32_0 : i32, i32
  }
  func.func @transform_5(%arg0: i32) -> (i32, i32) {
    %c0_i32 = arith.constant 0 : i32
    %c0_i32_0 = arith.constant 0 : i32
    %c0_i32_1 = arith.constant 0 : i32
    return %c0_i32, %c0_i32_0 : i32, i32
  }
  func.func @transform_6(%arg0: i32) -> (i32, i32) {
    %c0_i32 = arith.constant 0 : i32
    %c0_i32_0 = arith.constant 0 : i32
    %c0_i32_1 = arith.constant 0 : i32
    return %c0_i32, %c0_i32_0 : i32, i32
  }
  func.func @transform_7(%arg0: i32) -> (i32, i32, i32) {
    %c0_i32 = arith.constant 0 : i32
    %c0_i32_0 = arith.constant 0 : i32
    %c0_i32_1 = arith.constant 0 : i32
    %c0_i32_2 = arith.constant 0 : i32
    return %c0_i32, %c0_i32_0, %c0_i32_1 : i32, i32, i32
  }
  func.func @transform_8(%arg0: i32) -> (i32, i32) {
    %c0_i32 = arith.constant 0 : i32
    %c0_i32_0 = arith.constant 0 : i32
    %c0_i32_1 = arith.constant 0 : i32
    return %c0_i32, %c0_i32_0 : i32, i32
  }
  func.func @transform_9(%arg0: i32) -> (i32, i32) {
    %c0_i32 = arith.constant 0 : i32
    %c0_i32_0 = arith.constant 0 : i32
    %c0_i32_1 = arith.constant 0 : i32
    return %c0_i32, %c0_i32_0 : i32, i32
  }
  func.func @transform_10(%arg0: i32) -> (i32, i32) {
    %c0_i32 = arith.constant 0 : i32
    %c0_i32_0 = arith.constant 0 : i32
    %c0_i32_1 = arith.constant 0 : i32
    return %c0_i32, %c0_i32_0 : i32, i32
  }
  func.func @transform_11(%arg0: i32) -> (i32, i32) {
    %c0_i32 = arith.constant 0 : i32
    %c0_i32_0 = arith.constant 0 : i32
    %c0_i32_1 = arith.constant 0 : i32
    return %c0_i32, %c0_i32_0 : i32, i32
  }
  func.func @transform_12(%arg0: i32) -> (i32, i32) {
    %c0_i32 = arith.constant 0 : i32
    %c0_i32_0 = arith.constant 0 : i32
    %c0_i32_1 = arith.constant 0 : i32
    return %c0_i32, %c0_i32_0 : i32, i32
  }
  func.func @transform_13(%arg0: i32) -> (i32, i32) {
    %c0_i32 = arith.constant 0 : i32
    %c0_i32_0 = arith.constant 0 : i32
    %c0_i32_1 = arith.constant 0 : i32
    return %c0_i32, %c0_i32_0 : i32, i32
  }
  func.func @transform_14(%arg0: i32) -> (i32, i32, i32) {
    %c0_i32 = arith.constant 0 : i32
    %c0_i32_0 = arith.constant 0 : i32
    %c0_i32_1 = arith.constant 0 : i32
    return %arg0, %c0_i32, %c0_i32_0 : i32, i32, i32
  }
}

</mosaic_0001>

<bundles_post_ra>
// kernel: tpu_custom_call.1
= control target key start
LH: loop header
LB: loop body
LE: loop exit
PB: predicated region body
PF: predicated region fallthrough
CT: control target
= control target key end

     0   :  { %6 = vsyncpa [#allocation3], 0  ;;  %s305_s0 = inlined_call_operand.hbm [shape: f32[8,128], index: 0, kind: input, shape index: {}]   ;;  %s306_s1 = inlined_call_operand.hbm [shape: f32[8,128], index: 1, kind: output, shape index: {}]  }
   0x1   :  { %7 = vsyncpa [#allocation4], 0  ;;  %s258_s6 = smov 0  }
   0x2 LB: > { %s145_s7 = sadd.s32 4294967295, %s244_s6   ;;  %p146_p0 = scmp.ge.s32.totalorder %s244_s6, 1  ;;  %s244_s6 = sphi %s258_s6, %s13_s6  }
   0x3   : > { %p60_p1 = scmp.lt.s32.totalorder %s244_s6, 3  ;;  %p270_p3 = scmp.eq.s32.totalorder %s145_s7, 0 }
   0x4   : > { %s246_s10 = smov [#allocation2]  }
   0x5   : > { %p266_p2 = pnand %p146_p0, %p60_p1  ;;  %s73_s11 = sshll.u32 %s246_s10, 4  ;;  %s74_s11 = int_to_ptr.vmem [resolvable:$true] %s73_s11 }
   0x6   : > { %s191_s12 = scalar_lea.vmem %s74_s11, 128  ;;  %p199_p10 = scmp.lt.s32.totalorder %s74_s11, %s74_s11 }
   0x7   : > { %p162_p4 = pneg %p266_p2  ;;  %p192_p7 = scmp.ne.s32.totalorder %s74_s11, %s191_s12 }
   0x8   : > { %p200_p11 = scmp.lt.s32.totalorder %s191_s12, %s191_s12 }
   0x9   : > { %p163_p5 = pnand %p270_p3, %p162_p4 }
   0xa   : > { %p201_p12 = por %p200_p11, %p199_p10 }
   0xb   : > { %p182_p6 = pneg %p163_p5 }
   0xd   : > { %p194_p8 = pnand %p192_p7, %p182_p6 }
   0xf   : > { %p195_p9 = pneg %p194_p8 }
  0x11   : > { %p202_p13 = pnand %p201_p12, %p195_p9 }
  0x13   : > { %205 = shalt.err (!%p202_p13)
}
  0x14   : > { %165 = dma.hbm_to_vmem [thread:$0]  (!%p163_p5), %s305_s0, 128, %s74_s11, [#allocation3]  }
  0x15   : > { %86 = sbr.rel (%p266_p2) target bundleno = 42 (0x2a), region = 24 }
  0x1a   : > { %235 = dma.done.wait (%p270_p3), [#allocation3], 128  }
  0x1b   : > { %237 = vsyncadd (%p270_p3), [#allocation3], 4294967168  ;;  %s247_s15 = smov [#allocation5]   ;;  %v96_v0 = vld [vmem:[#allocation2] sm:$0xff]  ;;  %p287_p0 = scmp.eq.s32.totalorder %s145_s7, 1 }
  0x1c   : > { %s106_s16 = sshll.u32 %s247_s15, 4  ;;  %v97_v1 = vadd.f32 1.0, %v96_v0  ;;  %s107_s16 = int_to_ptr.vmem [resolvable:$true] %s106_s16 }
  0x1d   : > { %s206_s18 = scalar_lea.vmem %s107_s16, 128  ;;  %p213_p5 = scmp.lt.s32.totalorder %s107_s16, %s107_s16 }
  0x1e   : > { %98 = vst [vmem:[#allocation5] sm:$0xff] %v97_v1  ;;  %p207_p1 = scmp.ne.s32.totalorder %s107_s16, %s206_s18  ;;  %p214_p6 = scmp.lt.s32.totalorder %s206_s18, %s206_s18 }
  0x20   : > { %p208_p2 = pnand %p207_p1, %p287_p0  ;;  %p215_p7 = por %p214_p6, %p213_p5 }
  0x22   : > { %p209_p4 = pneg %p208_p2 }
  0x24   : > { %p216_p3 = pnand %p215_p7, %p209_p4 }
  0x26   : > { %219 = shalt.err (!%p216_p3)
}
  0x27   : > { %159 = dma.vmem_to_hbm [thread:$0]  (%p287_p0), %s107_s16, 128, %s306_s1, [#allocation4]  }
  0x28   : > { %239 = dma.done.wait (%p287_p0), [#allocation4], 128  }
  0x29   : > { %241 = vsyncadd (%p287_p0), [#allocation4], 4294967168 }
  0x2a PF: > { %s13_s6 = sadd.s32 1, %s244_s6  }
  0x2b   : > { %p10_p8 = scmp.ge.s32.totalorder %s13_s6, 4  }
  0x2d   :  { %12 = sbr.rel (!%p10_p8) target bundleno = 2 (0x2), region = 53 }
  0x32   :  { %119 = vsyncpa [#allocation3], 1 }
  0x33   :  { %121 = vsyncpa [#allocation3 + $0x1], 1 }
  0x34   :  { %122 = vsyncpa [#allocation4], 1 }
  0x35   :  { %124 = vsyncpa [#allocation4 + $0x1], 1 }

// kernel: tpu_custom_call.1
= control target key start
LH: loop header
LB: loop body
LE: loop exit
PB: predicated region body
PF: predicated region fallthrough
CT: control target
= control target key end

     0   :  { %s3113_s0 = inlined_call_operand.vmem [shape: f32[4,8,128], index: 0, kind: input, shape index: {}]   ;;  %s3114_s1 = inlined_call_operand.vmem [shape: f32[4,16,1], index: 1, kind: input, shape index: {}]   ;;  %s3115_s2 = inlined_call_operand.vmem [shape: f32[4,16,1], index: 2, kind: input, shape index: {}]   ;;  %s3116_s3 = inlined_call_operand.vmem [shape: f32[3,16,8], index: 3, kind: input, shape index: {}]   ;;  %s3117_s4 = inlined_call_operand.vmem [shape: f32[16,1], index: 4, kind: input, shape index: {}]   ;;  %s3118_s5 = inlined_call_operand.vmem [shape: f32[16,1], index: 5, kind: input, shape index: {}]   ;;  %s3119_s6 = inlined_call_operand.vmem [shape: f32[16,1], index: 6, kind: input, shape index: {}]   ;;  %s3120_s7 = inlined_call_operand.vmem [shape: f32[3,16,16], index: 7, kind: input, shape index: {}]   ;;  %s3121_s8 = inlined_call_operand.vmem [shape: f32[16,1], index: 8, kind: input, shape index: {}]   ;;  %s3122_s9 = inlined_call_operand.vmem [shape: f32[16,1], index: 9, kind: input, shape index: {}]   ;;  %s3123_s10 = inlined_call_operand.vmem [shape: f32[16,1], index: 10, kind: input, shape index: {}]   ;;  %s3124_s11 = inlined_call_operand.vmem [shape: f32[16,16], index: 11, kind: input, shape index: {}]   ;;  %s3125_s12 = inlined_call_operand.vmem [shape: f32[16,8], index: 12, kind: input, shape index: {}]   ;;  %s3126_s13 = inlined_call_operand.vmem [shape: f32[16,1], index: 13, kind: input, shape index: {}]   ;;  %s3127_s14 = inlined_call_operand.hbm [shape: f32[4,16,128], index: 14, kind: output, shape index: {}]  }
   0x1   :  { %3132 = sst [smem:[#allocation5_spill]] %s3113_s0 }
   0x2   :  { %3133 = sst [smem:[#allocation6_spill]] %s3114_s1 }
   0x3   :  { %3134 = sst [smem:[#allocation7_spill]] %s3115_s2 }
   0x4   :  { %3135 = sst [smem:[#allocation8_spill]] %s3116_s3 }
   0x5   :  { %19 = vsyncpa [#allocation3], 0 }
   0x6   :  { %21 = vsyncpa [#allocation3 + $0x1], 0  ;;  %s2705_s29 = smov 0   ;;  %s2707_s30 = smov 0  }
   0x7   :  { %s2709_s15 = smov 0   ;;  %s2711_s16 = smov 0  }
   0x8 LB: > { %s2726_s17 = sadd.s32 4294967295, %s2621_s16   ;;  %s2300_s18 = sadd.s32 4294967294, %s2621_s16   ;;  %s2621_s16 = sphi %s2711_s16, %s3151_s16   ;;  %s2617_s15 = sphi %s2709_s15, %s3150_s15   ;;  %s2613_s30 = sphi %s2707_s30, %s3149_s30   ;;  %s2609_s29 = sphi %s2705_s29, %s3148_s29  }
   0x9   : > { %s2730_s19 = sadd.s32 1, %s2621_s16   ;;  %s343_s20 = sadd.s32 1, %s2617_s15 }
   0xa   : > { %s340_s21 = ssub.s32 %s2621_s16, %s2730_s19  ;;  %p353_p0 = scmp.ne.s32.totalorder %s2617_s15, %s2613_s30 }
   0xb   : > { %p341_p1 = scmp.eq.s32.totalorder %s340_s21, 0  ;;  %p354_p2 = scmp.eq.s32.totalorder %s2726_s17, 1 }
   0xc   : > { %p359_p3 = scmp.ne.s32.totalorder %s2613_s30, %s2609_s29  ;;  %p360_p4 = scmp.eq.s32.totalorder %s2300_s18, 1 }
   0xd   : > { %s2741_s22 = scalar_select %p341_p1, %s2617_s15, %s343_s20  }
   0xe   : > { %p2743_p5 = por %p354_p2, %p353_p0  ;;  %p2747_p6 = por %p360_p4, %p359_p3 }
   0xf   : > { %p2303_p7 = scmp.ge.s32.totalorder %s2621_s16, 1  ;;  %p440_p8 = scmp.lt.s32.totalorder %s2621_s16, 3 }
  0x11   : > { %p441_p9 = pnand %p2303_p7, %p440_p8 }
  0x12   : > { %s2305_s25 = sshll.u32 (!%p441_p9), %s2726_s17, 1  ;;  %s3138_s0 = sld [smem:[#allocation5_spill]] (!%p441_p9) }
  0x13   : > { %444 = sbr.rel (%p441_p9) target bundleno = 2677 (0xa75), region = 76  ;;  %p499_p10 = scmp.lt.s32.totalorder (!%p441_p9), %s2305_s25, 3 }
  0x14   : > { %s3143_s3 = sld [smem:[#allocation8_spill]] (!%p441_p9)  ;;  %s3128_s28 = smov (!%p441_p9), 127  }
  0x15   : > { %s3144_s1 = sld [smem:[#allocation6_spill]] (!%p441_p9) }
  0x16   : > { %s3145_s2 = sld [smem:[#allocation7_spill]] (!%p441_p9) }
  0x18   : > { %v524_v0 = vlaneseq  ;;  %v2623_v1 = vmov 0.0   ;;  %s3153_s25 = smov (!%p499_p10, %s2305_s25), 3  ;;  %vm578_vm2 = vcmask 64512   ;;  %v2626_v15 = vmov 0   ;;  %v835_v16 = vld [vmem:[%s3117_s4] sm:$0xff]  ;;  %v836_v17 = vld [vmem:[%s3117_s4 + $0x8] sm:$0xff] }
  0x19   : > { %655 = vmatprep.mubr.f32.mxu1 %v2623_v1  ;;  %649 = vmatprep.mubr.f32.mxu0 %v2623_v1  ;;  %s2306_s26 = sshll.u32 %s3153_s25, 3  ;;  %v2846_v56 = vld [vmem:[%s3124_s11] sm:$0xff]  ;;  %vm859_vm7 = vcmask 130048   ;;  %v2855_v60 = vld [vmem:[%s3124_s11 + $0x8] sm:$0xff]  ;;  %s2372_s20 = sshll.u32 %s3153_s25, 4 }
  0x1a   : > { %v2756_v2 = vand.u32 127, %v524_v0  ;;  %s502_s18 = scalar_lea.vmem %s3138_s0, %s2306_s26  ;;  %v2315_v11 = vld [vmem:[%s3143_s3 + $0x18] sm:$0xff]  ;;  %v2314_v12 = vld [vmem:[%s3143_s3 + $0x10] sm:$0xff]  ;;  %2512 = vset.pattern.permute.xlu1 %v2626_v15  ;;  %2511 = vset.pattern.permute.xlu0 %v2626_v15  ;;  %v573_v26 = vld [vmem:[%s3143_s3] sm:$0xff]  ;;  %s3146_s25 = smov 1  }
  0x1b   : > { %v2767_v5 = vld [vmem:[%s502_s18] sm:$0xff]  ;;  %v2769_v6 = vld [vmem:[%s502_s18 + $0x8] sm:$0xff]  ;;  %s3130_s18 = smov 1  }
  0x1c   : > { %v526_v3 = vadd.s32 128, %v2756_v2  ;;  %vm562_vm0 = vcmp.eq.s32.totalorder %v2756_v2, 0  ;;  %vm551_vm1 = vcmp.eq.s32.totalorder %v2756_v2, 127  ;;  %2464 = vmatprep.subr.mxu1 %v2769_v6  ;;  %615 = vmatprep.subr.mxu0 %v2769_v6  ;;  %vm570_vm5 = vcmp.lt.s32.totalorder %v2756_v2, 127  ;;  %v2320_v27 = vld [vmem:[%s3143_s3 + $0x20] sm:$0xff]  ;;  %v574_v28 = vld [vmem:[%s3143_s3 + $0x8] sm:$0xff]  ;;  %s516_s21 = scalar_lea.vmem %s3145_s2, %s2372_s20 }
  0x1d   : > { %v564_v7 = vsel %vm562_vm0, 0.0, %v2767_v5  ;;  %v553_v8 = vsel %vm551_vm1, 0.0, %v2767_v5  ;;  %2465 = vmatpush1.msra.mxu1 %v2767_v5  ;;  %616 = vmatpush1.msra.mxu0 %v2767_v5  ;;  %vm559_vm6 = vcmp.lt.s32.totalorder %v2756_v2, 1  ;;  %v2321_v29 = vld [vmem:[%s3143_s3 + $0x28] sm:$0xff]  ;;  %v1645_v10 = vld [vmem:[%s3121_s8] sm:$0xff]  ;;  %s495_s3 = sand.u32 1, %s2613_s30  }
  0x1e   : > { %v538_v4 = vand.u32 127, %v526_v3  ;;  %566 = vrot.lane.b32.xlu1 %v564_v7, %s3128_s28  ;;  %555 = vrot.lane.b32.xlu0 %v553_v8, %s3130_s18  ;;  %v2347_v2 = vld [vmem:[%s3120_s7 + $0x28] sm:$0xff]  ;;  %s3073_s0 = scalar_lea.sflag [#allocation3], %s495_s3 }
  0x1f   : > { %2317 = vmatmul.mubr.msk.f32.vlgmr.msra.gmra.mxu1 %vm578_vm2, %v2315_v11  ;;  %2316 = vmatmul.mubr.msk.f32.vlgmr.msra.gmra.mxu0 %vm578_vm2, %v2314_v12 }
  0x20   : > { %vm2777_vm3 = vcmp.eq.s32.totalorder %v538_v4, 0  ;;  %vm2781_vm4 = vcmp.eq.s32.totalorder %v538_v4, 127  ;;  %732 = vmatprep.mubr.f32.mxu1 %v2623_v1  ;;  %818 = vmatprep.mubr.f32.mxu0 %v2623_v1 }
  0x21   : > { %v565_v13 = vsel %vm2777_vm3, 0.0, %v2769_v6  ;;  %v554_v14 = vsel %vm2781_vm4, 0.0, %v2769_v6 }
  0x22   : > { %568 = vrot.lane.b32.xlu1 %v565_v13, %s3128_s28  ;;  %557 = vrot.lane.b32.xlu0 %v554_v14, %s3130_s18  ;;  %s2886_s18 = scalar_lea.vmem %s3144_s1, %s2372_s20  ;;  %s3147_s20 = smov 127  }
  0x26   : > { %839 = vperm.xlu1 %2512, %v835_v16   ;;  %844 = vperm.xlu0 %2511, %v836_v17  }
  0x90   : > { %v567_v18 = vpop.permute.xlu1 %566  ;;  %v556_v19 = vpop.permute.xlu0 %555 }
  0x94   : > { %v569_v20 = vpop.permute.xlu1 %568  ;;  %v558_v21 = vpop.permute.xlu0 %557 }
  0x95   : > { %v571_v22 = vsel %vm570_vm5, %v567_v18, %v569_v20  ;;  %v561_v23 = vsel %vm559_vm6, %v558_v21, %v556_v19  ;;  %v560_v24 = vsel %vm559_vm6, %v556_v19, %v558_v21  ;;  %v572_v25 = vsel %vm570_vm5, %v569_v20, %v567_v18  ;;  %v854_v20 = vld [vmem:[%s3119_s6 + $0x8] sm:$0xff] }
  0x96   : > { %698 = vmatprep.subr.mxu1 %v560_v24  ;;  %784 = vmatprep.subr.mxu0 %v572_v25  ;;  %v1073_v21 = vld [vmem:[%s2886_s18 + $0x8] sm:$0xff] }
  0x97   : > { %699 = vmatpush1.msra.mxu1 %v561_v23  ;;  %785 = vmatpush1.msra.mxu0 %v571_v22  ;;  %v1075_v22 = vadd.f32 1.0, %v1073_v21  ;;  %v1072_v23 = vld [vmem:[%s2886_s18] sm:$0xff]  ;;  %v852_v24 = vld [vmem:[%s3118_s5 + $0x8] sm:$0xff] }
  0x98   : > { %2318 = vmatmul.mubr.msk.f32.vlgmr.msra.gmra.mxu1 %vm578_vm2, %v573_v26  ;;  %2322 = vmatmul.mubr.msk.f32.vlgmr.msra.gmra.mxu0 %vm578_vm2, %v2320_v27  ;;  %v1074_v25 = vadd.f32 1.0, %v1072_v23  ;;  %v851_v26 = vld [vmem:[%s3118_s5] sm:$0xff] }
  0x99   : > { %738 = vmatprep.mubr.f32.mxu1 %v2623_v1  ;;  %824 = vmatprep.mubr.f32.mxu0 %v2623_v1  ;;  %v853_v27 = vld [vmem:[%s3119_s6] sm:$0xff] }
  0x9c   : > { %2319 = vmatmul.mubr.msk.f32.gmra.mxu1 %vm578_vm2, %v574_v28  ;;  %2323 = vmatmul.mubr.msk.f32.gmra.mxu0 %vm578_vm2, %v2321_v29  ;;  %v2335_v28 = vld [vmem:[%s2886_s18 + $0x18] sm:$0xff] }
  0x9d   : > { %2412 = vmatprep.mubr.msk.f32.mxu1 %vm859_vm7, %v2846_v56  ;;  %2426 = vmatprep.mubr.msk.f32.mxu0 %vm859_vm7, %v2846_v56  ;;  %v1310_v29 = vadd.f32 1.0, %v2335_v28 }
  0xa1   : > { %v840_v37 = vpop.permute.xlu1 %839  ;;  %v845_v47 = vpop.permute.xlu0 %844 }
  0xdf   : > { %v651_v30 = vpop.f32.mrf.mxu0  ;;  %v657_v31 = vpop.f32.mrf.mxu1 }
  0xe1   : > { %v653_v32 = vpop.f32.mrf.mxu0  ;;  %v659_v33 = vpop.f32.mrf.mxu1 }
 0x158   : > { %v734_v34 = vpop.f32.mrf.mxu1  ;;  %v820_v35 = vpop.f32.mrf.mxu0 }
 0x159   : > { %v735_v36 = vadd.f32 %v734_v34, %v651_v30 }
 0x15a   : > { %v736_v38 = vpop.f32.mrf.mxu1  ;;  %v822_v39 = vpop.f32.mrf.mxu0 }
 0x15b   : > { %v831_v40 = vadd.f32 %v820_v35, %v735_v36  ;;  %v737_v43 = vadd.f32 %v736_v38, %v653_v32 }
 0x15c   : > { %v826_v41 = vpop.f32.mrf.mxu0  ;;  %v740_v42 = vpop.f32.mrf.mxu1 }
 0x15d   : > { %v741_v44 = vadd.f32 %v740_v42, %v657_v31  ;;  %v847_v45 = vadd.f32 %v840_v37, %v831_v40  ;;  %v832_v51 = vadd.f32 %v822_v39, %v737_v43 }
 0x15e   : > { %v742_v46 = vpop.f32.mrf.mxu1  ;;  %v828_v50 = vpop.f32.mrf.mxu0 }
 0x15f   : > { %v833_v48 = vadd.f32 %v826_v41, %v741_v44  ;;  %v743_v49 = vadd.f32 %v742_v46, %v659_v33  ;;  %855 = vadd.xlane.f32.xlu0 %v847_v45  ;;  %v848_v55 = vadd.f32 %v840_v37, %v832_v51  ;;  %v1089_v44 = vld [vmem:[%s516_s21 + $0x8] sm:$0xff]  ;;  %v2337_v46 = vld [vmem:[%s516_s21 + $0x18] sm:$0xff]  ;;  %v1088_v51 = vld [vmem:[%s516_s21] sm:$0xff] }
 0x161   : > { %v834_v52 = vadd.f32 %v828_v50, %v743_v49  ;;  %v849_v53 = vadd.f32 %v845_v47, %v833_v48  ;;  %v2336_v49 = vld [vmem:[%s516_s21 + $0x10] sm:$0xff]  ;;  %s2304_s21 = sshll.u32 %s495_s3, 5 }
 0x163   : > { %857 = vadd.xlane.f32.xlu1 %v849_v53  ;;  %v850_v54 = vadd.f32 %v845_v47, %v834_v52  ;;  %v2334_v47 = vld [vmem:[%s2886_s18 + $0x10] sm:$0xff]  ;;  %s497_s18 = scalar_lea.vmem [#allocation2], %s2304_s21  ;;  %s2627_s21 = smov [#allocation2]  }
 0x164   : > { %v1309_v50 = vadd.f32 1.0, %v2334_v47  ;;  %s2565_s1 = sshll.u32 %s2627_s21, 4  ;;  %s2566_s1 = int_to_ptr.vmem [resolvable:$false] %s2565_s1 }
 0x165   : > { %1118 = vadd.xlane.f32.xlu0 %v850_v54  ;;  %s2567_s2 = scalar_lea.vmem %s2566_s1, 1024 }
 0x167   : > { %1116 = vadd.xlane.f32.xlu1 %v848_v55 }
 0x1e8   : > { %v856_v57 = vpop.xlane.xlu0 %855 }
 0x1ec   : > { %v858_v58 = vpop.xlane.xlu1 %857 }
 0x1ed   : > { %2408 = vmatprep.subr.mxu1 %v858_v58 }
 0x1ee   : > { %2409 = vmatpush3.msra.mxu1 %v858_v58  ;;  %v1119_v59 = vpop.xlane.xlu0 %1118 }
 0x1ef   : > { %2410 = vmatprep.subr.mxu1 %v856_v57  ;;  %2422 = vmatprep.subr.mxu0 %v1119_v59 }
 0x1f0   : > { %v1117_v61 = vpop.xlane.xlu1 %1116  ;;  %2411 = vmatpush3.msra.mxu1 %v856_v57  ;;  %2423 = vmatpush3.msra.mxu0 %v1119_v59 }
 0x1f1   : > { %2413 = vmatmul.mubr.msk.f32.vlgmr.msra.gmra.mxu1 %vm859_vm7, %v2855_v60  ;;  %2424 = vmatprep.subr.mxu0 %v1117_v61 }
 0x1f2   : > { %2425 = vmatpush3.msra.mxu0 %v1117_v61  ;;  %2419 = vmatprep.mubr.msk.f32.mxu1 %vm859_vm7, %v2846_v56 }
 0x1f3   : > { %2427 = vmatmul.mubr.msk.f32.vlgmr.msra.gmra.mxu0 %vm859_vm7, %v2855_v60 }
 0x1f4   : > { %1459 = vmatprep.mubr.f32.mxu0 %v2623_v1 }
 0x2b1   : > { %v2414_v62 = vpop.f32.mrf.mxu1 }
 0x2b2   : > { %948 = vperm.xlu0 %2511, %v2414_v62  }
 0x2b3   : > { %v932_v63 = vpop.f32.mrf.mxu1  ;;  %v2428_v0 = vpop.f32.mrf.mxu0 }
 0x2b4   : > { %943 = vperm.xlu1 %2512, %v932_v63  }
 0x2b5   : > { %v1186_v3 = vpop.f32.mrf.mxu0 }
 0x2b6   : > { %1197 = vperm.xlu0 %2511, %v1186_v3  }
 0x2b8   : > { %1202 = vperm.xlu1 %2512, %v2428_v0  }
 0x32d   : > { %v949_v4 = vpop.permute.xlu0 %948 }
 0x32e   : > { %v2864_v7 = vsub.f32 %v849_v53, %v949_v4 }
 0x32f   : > { %v944_v8 = vpop.permute.xlu1 %943 }
 0x330   : > { %v2866_v11 = vsub.f32 %v847_v45, %v944_v8  ;;  %v954_v12 = vmul.f32 %v2864_v7, %v2864_v7 }
 0x331   : > { %v1198_v13 = vpop.permute.xlu0 %1197 }
 0x332   : > { %v2870_v14 = vsub.f32 %v848_v55, %v1198_v13  ;;  %957 = vadd.xlane.f32.xlu1 %v954_v12  ;;  %v953_v15 = vmul.f32 %v2866_v11, %v2866_v11 }
 0x333   : > { %v1203_v16 = vpop.permute.xlu1 %1202 }
 0x334   : > { %v2874_v17 = vsub.f32 %v850_v54, %v1203_v16  ;;  %955 = vadd.xlane.f32.xlu0 %v953_v15  ;;  %v1207_v18 = vmul.f32 %v2870_v14, %v2870_v14 }
 0x336   : > { %1209 = vadd.xlane.f32.xlu1 %v1207_v18  ;;  %v1208_v19 = vmul.f32 %v2874_v17, %v2874_v17 }
 0x338   : > { %1211 = vadd.xlane.f32.xlu0 %v1208_v19 }
 0x347   : > { %1067 = vperm.xlu1 %2512, %v854_v20  }
 0x34b   : > { %1083 = vperm.xlu1 %2512, %v1075_v22  }
 0x34e   : > { %1055 = vperm.xlu0 %2511, %v852_v24  }
 0x34f   : > { %1078 = vperm.xlu1 %2512, %v1074_v25  }
 0x352   : > { %1050 = vperm.xlu0 %2511, %v851_v26  }
 0x356   : > { %1062 = vperm.xlu0 %2511, %v853_v27  }
 0x35a   : > { %1318 = vperm.xlu0 %2511, %v1310_v29  }
 0x3bb   : > { %v958_v30 = vpop.xlane.xlu1 %957 }
 0x3bc   : > { %2415 = vmatprep.subr.mxu1 %v958_v30 }
 0x3bd   : > { %2416 = vmatpush3.msra.mxu1 %v958_v30  ;;  %v956_v31 = vpop.xlane.xlu0 %955 }
 0x3be   : > { %2417 = vmatprep.subr.mxu1 %v956_v31 }
 0x3bf   : > { %2418 = vmatpush3.msra.mxu1 %v956_v31  ;;  %v1210_v33 = vpop.xlane.xlu1 %1209 }
 0x3c0   : > { %2420 = vmatmul.mubr.msk.f32.vlgmr.msra.gmra.mxu1 %vm859_vm7, %v2855_v60 }
 0x3c1   : > { %v1212_v32 = vpop.xlane.xlu0 %1211  ;;  %2433 = vmatprep.mubr.msk.f32.mxu1 %vm859_vm7, %v2846_v56 }
 0x3c2   : > { %2429 = vmatprep.subr.mxu1 %v1212_v32 }
 0x3c3   : > { %2430 = vmatpush3.msra.mxu1 %v1212_v32  ;;  %v1068_v54 = vpop.permute.xlu1 %1067 }
 0x3c4   : > { %2431 = vmatprep.subr.mxu1 %v1210_v33 }
 0x3c5   : > { %2432 = vmatpush3.msra.mxu1 %v1210_v33 }
 0x3c6   : > { %2434 = vmatmul.mubr.msk.f32.vlgmr.msra.gmra.mxu1 %vm859_vm7, %v2855_v60 }
 0x3c7   : > { %1542 = vmatprep.mubr.f32.mxu1 %v2623_v1  ;;  %v1084_v57 = vpop.permute.xlu1 %1083 }
 0x3c9   : > { %v1056_v52 = vpop.permute.xlu0 %1055 }
 0x3cb   : > { %v1079_v59 = vpop.permute.xlu1 %1078 }
 0x3cd   : > { %v1051_v53 = vpop.permute.xlu0 %1050 }
 0x3d1   : > { %v1063_v55 = vpop.permute.xlu0 %1062 }
 0x3d5   : > { %v1319_v58 = vpop.permute.xlu0 %1318 }
 0x480   : > { %v2421_v34 = vpop.f32.mrf.mxu1 }
 0x481   : > { %v1031_v35 = vadd.f32 1e-05, %v2421_v34 }
 0x482   : > { %v1025_v36 = vpop.f32.mrf.mxu1 }
 0x483   : > { %2513 = vrsqrt.f32 %v1031_v35  ;;  %v1026_v37 = vadd.f32 1e-05, %v1025_v36 }
 0x485   : > { %2515 = vrsqrt.f32 %v1026_v37 }
 0x486   : > { %v2435_v38 = vpop.f32.mrf.mxu1 }
 0x487   : > { %v1285_v39 = vadd.f32 1e-05, %v2435_v38 }
 0x488   : > { %v1279_v40 = vpop.f32.mrf.mxu1 }
 0x489   : > { %2517 = vrsqrt.f32 %v1285_v39  ;;  %v1280_v41 = vadd.f32 1e-05, %v1279_v40 }
 0x48b   : > { %2519 = vrsqrt.f32 %v1280_v41 }
 0x490   : > { %v2514_v42 = vpop.eup %2513 }
 0x491   : > { %1043 = vperm.xlu0 %2511, %v2514_v42  }
 0x492   : > { %v2516_v43 = vpop.eup %2515 }
 0x493   : > { %1038 = vperm.xlu1 %2512, %v2516_v43  }
 0x495   : > { %1097 = vperm.xlu0 %2511, %v1089_v44  }
 0x496   : > { %v2518_v45 = vpop.eup %2517 }
 0x497   : > { %1297 = vperm.xlu1 %2512, %v2518_v45  }
 0x498   : > { %v2520_v48 = vpop.eup %2519 }
 0x499   : > { %1333 = vperm.xlu0 %2511, %v2337_v46  }
 0x49b   : > { %1292 = vperm.xlu1 %2512, %v2520_v48  }
 0x49d   : > { %1328 = vperm.xlu0 %2511, %v2336_v49  }
 0x49f   : > { %1313 = vperm.xlu1 %2512, %v1309_v50  }
 0x4a3   : > { %1092 = vperm.xlu1 %2512, %v1088_v51  }
 0x50c   : > { %v1044_v61 = vpop.permute.xlu0 %1043 }
 0x50d   : > { %v1047_v62 = vmul.f32 %v1044_v61, %v2864_v7 }
 0x50e   : > { %v1039_v63 = vpop.permute.xlu1 %1038 }
 0x50f   : > { %v1059_v0 = vmul.f32 %v1056_v52, %v1047_v62  ;;  %v1046_v3 = vmul.f32 %v1039_v63, %v2866_v11  ;;  %v1646_v63 = vld [vmem:[%s3121_s8 + $0x8] sm:$0xff] }
 0x510   : > { %v1098_v8 = vpop.permute.xlu0 %1097 }
 0x511   : > { %v1071_v4 = vadd.f32 %v1068_v54, %v1059_v0  ;;  %v1058_v16 = vmul.f32 %v1051_v53, %v1046_v3 }
 0x512   : > { %v1298_v12 = vpop.permute.xlu1 %1297 }
 0x513   : > { %v1087_v13 = vmul.f32 %v1084_v57, %v1071_v4  ;;  %v1301_v15 = vmul.f32 %v1298_v12, %v2874_v17  ;;  %v1070_v26 = vadd.f32 %v1063_v55, %v1058_v16 }
 0x514   : > { %v1334_v24 = vpop.permute.xlu0 %1333 }
 0x515   : > { %v1101_v18 = vadd.f32 %v1098_v8, %v1087_v13  ;;  %v1303_v19 = vmul.f32 %v1301_v15, %v1056_v52  ;;  %v1086_v31 = vmul.f32 %v1079_v59, %v1070_v26  ;;  %v2341_v59 = vld [vmem:[%s3120_s7 + $0x18] sm:$0xff]  ;;  %v1385_v26 = vld [vmem:[%s3120_s7 + $0x8] sm:$0xff] }
 0x516   : > { %v1293_v20 = vpop.permute.xlu1 %1292 }
 0x517   : > { %v2329_v21 = vmul.f32 -1.442695, %v1101_v18  ;;  %v1305_v22 = vadd.f32 %v1303_v19, %v1068_v54  ;;  %v1300_v23 = vmul.f32 %v1293_v20, %v2870_v14 }
 0x518   : > { %v1329_v17 = vpop.permute.xlu0 %1328 }
 0x519   : > { %2521 = vpow2.f32 %v2329_v21  ;;  %v1322_v7 = vmul.f32 %v1319_v58, %v1305_v22  ;;  %v1302_v25 = vmul.f32 %v1300_v23, %v1051_v53  ;;  %v1384_v22 = vld [vmem:[%s3120_s7] sm:$0xff] }
 0x51a   : > { %v1314_v11 = vpop.permute.xlu1 %1313 }
 0x51b   : > { %v1337_v27 = vadd.f32 %v1334_v24, %v1322_v7  ;;  %v1304_v28 = vadd.f32 %v1302_v25, %v1063_v55  ;;  %v2340_v55 = vld [vmem:[%s3120_s7 + $0x10] sm:$0xff] }
 0x51d   : > { %v2339_v29 = vmul.f32 -1.442695, %v1337_v27  ;;  %v1321_v30 = vmul.f32 %v1314_v11, %v1304_v28  ;;  %v2346_v11 = vld [vmem:[%s3120_s7 + $0x20] sm:$0xff] }
 0x51e   : > { %v1093_v32 = vpop.permute.xlu1 %1092 }
 0x51f   : > { %2523 = vpow2.f32 %v2339_v29  ;;  %v1336_v33 = vadd.f32 %v1329_v17, %v1321_v30  ;;  %v1100_v34 = vadd.f32 %v1093_v32, %v1086_v31 }
 0x521   : > { %v2338_v35 = vmul.f32 -1.442695, %v1336_v33  ;;  %v2328_v36 = vmul.f32 -1.442695, %v1100_v34 }
 0x523   : > { %2525 = vpow2.f32 %v2338_v35 }
 0x524   : > { %2527 = vpow2.f32 %v2328_v36 }
 0x526   : > { %v2522_v14 = vpop.eup %2521 }
 0x527   : > { %v1109_v37 = vadd.f32 1.0, %v2522_v14 }
 0x529   : > { %2529 = vrcp.f32 %v1109_v37 }
 0x52c   : > { %v2524_v38 = vpop.eup %2523 }
 0x52d   : > { %v1345_v39 = vadd.f32 1.0, %v2524_v38 }
 0x52f   : > { %2531 = vrcp.f32 %v1345_v39 }
 0x530   : > { %v2526_v40 = vpop.eup %2525 }
 0x531   : > { %v2528_v41 = vpop.eup %2527  ;;  %v1344_v42 = vadd.f32 1.0, %v2526_v40 }
 0x532   : > { %v1108_v43 = vadd.f32 1.0, %v2528_v41 }
 0x533   : > { %2533 = vrcp.f32 %v1344_v42 }
 0x534   : > { %2535 = vrcp.f32 %v1108_v43 }
 0x536   : > { %v2530_v44 = vpop.eup %2529 }
 0x537   : > { %v1115_v45 = vmul.f32 %v2530_v44, %v1101_v18 }
 0x539   : > { %v1354_v46 = vsel %vm551_vm1, 0.0, %v1115_v45  ;;  %v1370_v49 = vsel %vm562_vm0, 0.0, %v1115_v45 }
 0x53a   : > { %1358 = vrot.lane.b32.xlu1 %v1354_v46, %s3146_s25 }
 0x53c   : > { %v2532_v47 = vpop.eup %2531 }
 0x53d   : > { %v1351_v48 = vmul.f32 %v2532_v47, %v1337_v27 }
 0x53e   : > { %1374 = vrot.lane.b32.xlu1 %v1370_v49, %s3147_s20 }
 0x53f   : > { %1423 = vmatprep.subr.mxu0 %v1351_v48  ;;  %v1355_v50 = vsel %vm2781_vm4, 0.0, %v1351_v48  ;;  %v1371_v57 = vsel %vm2777_vm3, 0.0, %v1351_v48 }
 0x540   : > { %v2534_v51 = vpop.eup %2533  ;;  %1424 = vmatpush1.msra.mxu0 %v1115_v45  ;;  %1362 = vrot.lane.b32.xlu0 %v1355_v50, %s3146_s25 }
 0x541   : > { %v2536_v52 = vpop.eup %2535  ;;  %v1350_v53 = vmul.f32 %v2534_v51, %v1336_v33 }
 0x542   : > { %v1114_v54 = vmul.f32 %v2536_v52, %v1100_v34 }
 0x543   : > { %1425 = vmatprep.subr.mxu0 %v1350_v53  ;;  %v1353_v61 = vsel %vm2781_vm4, 0.0, %v1350_v53  ;;  %v1369_v0 = vsel %vm2777_vm3, 0.0, %v1350_v53 }
 0x544   : > { %v1352_v58 = vsel %vm551_vm1, 0.0, %v1114_v54  ;;  %1378 = vrot.lane.b32.xlu0 %v1371_v57, %s3147_s20  ;;  %1426 = vmatpush1.msra.mxu0 %v1114_v54  ;;  %v1368_v62 = vsel %vm562_vm0, 0.0, %v1114_v54 }
 0x545   : > { %1356 = vrot.lane.b32.xlu1 %v1352_v58, %s3146_s25  ;;  %2342 = vmatmul.mubr.msk.f32.vlgmr.msra.gmra.mxu0 %vm859_vm7, %v2340_v55 }
 0x546   : > { %1465 = vmatprep.mubr.f32.mxu0 %v2623_v1 }
 0x548   : > { %1360 = vrot.lane.b32.xlu0 %v1353_v61, %s3146_s25  ;;  %s2214_s25 = sshll.u32 %s497_s18, 4  ;;  %s3064_s25 = int_to_ptr.vmem [resolvable:$true] %s2214_s25 }
 0x549   : > { %1372 = vrot.lane.b32.xlu1 %v1368_v62, %s3147_s20  ;;  %2343 = vmatmul.mubr.msk.f32.gmra.mxu0 %vm859_vm7, %v2341_v59  ;;  %p2568_p0 = scmp.lt.s32.totalorder %s3064_s25, %s2566_s1 }
 0x54a   : > { %1628 = vmatprep.mubr.f32.mxu0 %v2623_v1 }
 0x54c   : > { %1376 = vrot.lane.b32.xlu0 %v1369_v0, %s3147_s20  ;;  %s2375_s20 = sshll.u32 %s2726_s17, 9  ;;  %s2561_s17 = scalar_lea.vmem %s3064_s25, 512 }
 0x54d   : > { %1654 = vperm.xlu1 %2512, %v1646_v63   ;;  %s3069_s27 = scalar_lea.hbm %s3127_s14, %s2375_s20  ;;  %p2562_p11 = scmp.ne.s32.totalorder %s3064_s25, %s2561_s17 }
 0x54e   : > { %p2569_p1 = scmp.lt.s32.totalorder %s2567_s2, %s2561_s17 }
 0x54f   : > { %p2563_p12 = pnand %p2562_p11, %p2743_p5 }
 0x550   : > { %1649 = vperm.xlu0 %2511, %v1645_v10   ;;  %p2570_p2 = por %p2569_p1, %p2568_p0 }
 0x551   : > { %p2564_p13 = pneg %p2563_p12 }
 0x553   : > { %p2571_p3 = pnand %p2570_p2, %p2564_p13 }
 0x5ac   : > { %v1359_v3 = vpop.permute.xlu1 %1358 }
 0x5b0   : > { %v1375_v13 = vpop.permute.xlu1 %1374 }
 0x5b2   : > { %v1363_v4 = vpop.permute.xlu0 %1362 }
 0x5b3   : > { %v1367_v8 = vsel %vm559_vm6, %v1363_v4, %v1359_v3  ;;  %v1365_v12 = vsel %vm559_vm6, %v1359_v3, %v1363_v4 }
 0x5b4   : > { %1506 = vmatprep.subr.mxu1 %v1365_v12 }
 0x5b5   : > { %1507 = vmatpush1.msra.mxu1 %v1367_v8 }
 0x5b6   : > { %v1379_v9 = vpop.permute.xlu0 %1378 }
 0x5b7   : > { %v1381_v15 = vsel %vm570_vm5, %v1375_v13, %v1379_v9  ;;  %v1383_v16 = vsel %vm570_vm5, %v1379_v9, %v1375_v13  ;;  %v1357_v18 = vpop.permute.xlu1 %1356  ;;  %v1661_v9 = vld [vmem:[%s3122_s9] sm:$0xff] }
 0x5b8   : > { %1592 = vmatprep.subr.mxu0 %v1383_v16  ;;  %v1662_v16 = vld [vmem:[%s3122_s9 + $0x8] sm:$0xff] }
 0x5b9   : > { %1593 = vmatpush1.msra.mxu0 %v1381_v15  ;;  %v1663_v15 = vld [vmem:[%s3123_s10] sm:$0xff] }
 0x5ba   : > { %v1361_v19 = vpop.permute.xlu0 %1360 }
 0x5bb   : > { %v1366_v20 = vsel %vm559_vm6, %v1361_v19, %v1357_v18  ;;  %v1364_v21 = vsel %vm559_vm6, %v1357_v18, %v1361_v19  ;;  %v1373_v23 = vpop.permute.xlu1 %1372  ;;  %v2093_v18 = vld [vmem:[%s3125_s12] sm:$0xff]  ;;  %v1664_v19 = vld [vmem:[%s3123_s10 + $0x8] sm:$0xff] }
 0x5bc   : > { %1508 = vmatprep.subr.mxu1 %v1364_v21 }
 0x5bd   : > { %1509 = vmatpush1.msra.mxu1 %v1366_v20  ;;  %v2094_v20 = vld [vmem:[%s3125_s12 + $0x8] sm:$0xff] }
 0x5be   : > { %2344 = vmatmul.mubr.msk.f32.vlgmr.msra.gmra.mxu1 %vm859_vm7, %v1384_v22  ;;  %v1377_v24 = vpop.permute.xlu0 %1376 }
 0x5bf   : > { %v1380_v7 = vsel %vm570_vm5, %v1373_v23, %v1377_v24  ;;  %v1382_v25 = vsel %vm570_vm5, %v1377_v24, %v1373_v23  ;;  %1548 = vmatprep.mubr.f32.mxu1 %v2623_v1 }
 0x5c0   : > { %1594 = vmatprep.subr.mxu0 %v1382_v25 }
 0x5c1   : > { %1595 = vmatpush1.msra.mxu0 %v1380_v7 }
 0x5c2   : > { %2345 = vmatmul.mubr.msk.f32.gmra.mxu1 %vm859_vm7, %v1385_v26  ;;  %2348 = vmatmul.mubr.msk.f32.vlgmr.msra.gmra.mxu0 %vm859_vm7, %v2346_v11 }
 0x5c3   : > { %1634 = vmatprep.mubr.f32.mxu0 %v2623_v1  ;;  %2440 = vmatprep.mubr.msk.f32.mxu1 %vm859_vm7, %v2846_v56 }
 0x5c6   : > { %2349 = vmatmul.mubr.msk.f32.gmra.mxu0 %vm859_vm7, %v2347_v2 }
 0x5c7   : > { %2454 = vmatprep.mubr.msk.f32.mxu0 %vm859_vm7, %v2846_v56 }
 0x5c8   : > { %v1655_v44 = vpop.permute.xlu1 %1654 }
 0x5cb   : > { %v1650_v35 = vpop.permute.xlu0 %1649 }
 0x605   : > { %v1461_v27 = vpop.f32.mrf.mxu0 }
 0x607   : > { %v1463_v28 = vpop.f32.mrf.mxu0 }
 0x609   : > { %v1467_v29 = vpop.f32.mrf.mxu0 }
 0x60b   : > { %v1469_v31 = vpop.f32.mrf.mxu0 }
 0x67e   : > { %v1544_v30 = vpop.f32.mrf.mxu1 }
 0x67f   : > { %v1545_v32 = vadd.f32 %v1544_v30, %v1461_v27 }
 0x680   : > { %v1546_v17 = vpop.f32.mrf.mxu1 }
 0x681   : > { %v1547_v41 = vadd.f32 %v1546_v17, %v1463_v28  ;;  %v2095_v17 = vld [vmem:[%s3126_s13] sm:$0xff] }
 0x682   : > { %v1550_v33 = vpop.f32.mrf.mxu1  ;;  %v1630_v34 = vpop.f32.mrf.mxu0 }
 0x683   : > { %v1641_v36 = vadd.f32 %v1630_v34, %v1545_v32  ;;  %v1551_v38 = vadd.f32 %v1550_v33, %v1467_v29 }
 0x684   : > { %v1552_v14 = vpop.f32.mrf.mxu1  ;;  %v1632_v37 = vpop.f32.mrf.mxu0 }
 0x685   : > { %v1657_v39 = vadd.f32 %v1650_v35, %v1641_v36  ;;  %v1553_v42 = vadd.f32 %v1552_v14, %v1469_v31  ;;  %v1642_v46 = vadd.f32 %v1632_v37, %v1547_v41 }
 0x686   : > { %v1636_v40 = vpop.f32.mrf.mxu0 }
 0x687   : > { %v1643_v43 = vadd.f32 %v1636_v40, %v1551_v38  ;;  %1665 = vadd.xlane.f32.xlu0 %v1657_v39  ;;  %v1658_v50 = vadd.f32 %v1650_v35, %v1642_v46 }
 0x688   : > { %v1638_v45 = vpop.f32.mrf.mxu0 }
 0x689   : > { %v1644_v47 = vadd.f32 %v1638_v45, %v1553_v42  ;;  %v1659_v48 = vadd.f32 %v1655_v44, %v1643_v43 }
 0x68b   : > { %1667 = vadd.xlane.f32.xlu1 %v1659_v48  ;;  %v1660_v49 = vadd.f32 %v1655_v44, %v1644_v47 }
 0x68d   : > { %1891 = vadd.xlane.f32.xlu0 %v1660_v49 }
 0x68f   : > { %1889 = vadd.xlane.f32.xlu1 %v1658_v50 }
 0x710   : > { %v1666_v51 = vpop.xlane.xlu0 %1665 }
 0x714   : > { %v1668_v52 = vpop.xlane.xlu1 %1667 }
 0x715   : > { %2436 = vmatprep.subr.mxu1 %v1668_v52 }
 0x716   : > { %2437 = vmatpush3.msra.mxu1 %v1668_v52  ;;  %v1892_v53 = vpop.xlane.xlu0 %1891 }
 0x717   : > { %2438 = vmatprep.subr.mxu1 %v1666_v51  ;;  %2450 = vmatprep.subr.mxu0 %v1892_v53 }
 0x718   : > { %v1890_v54 = vpop.xlane.xlu1 %1889  ;;  %2439 = vmatpush3.msra.mxu1 %v1666_v51  ;;  %2451 = vmatpush3.msra.mxu0 %v1892_v53 }
 0x719   : > { %2441 = vmatmul.mubr.msk.f32.vlgmr.msra.gmra.mxu1 %vm859_vm7, %v2855_v60  ;;  %2452 = vmatprep.subr.mxu0 %v1890_v54 }
 0x71a   : > { %2453 = vmatpush3.msra.mxu0 %v1890_v54  ;;  %2447 = vmatprep.mubr.msk.f32.mxu1 %vm859_vm7, %v2846_v56 }
 0x71b   : > { %2455 = vmatmul.mubr.msk.f32.vlgmr.msra.gmra.mxu0 %vm859_vm7, %v2855_v60  ;;  %2143 = vmatprep.subr.mxu0 %v2769_v6 }
 0x71c   : > { %2144 = vmatpush1.msra.mxu0 %v2767_v5  ;;  %2177 = vmatprep.mubr.f32.mxu0 %v2623_v1 }
 0x71f   : > { %2362 = vmatmul.mubr.msk.f32.vlgmr.msra.gmra.mxu0 %vm578_vm2, %v2093_v18 }
 0x720   : > { %2183 = vmatprep.mubr.f32.mxu0 %v2623_v1 }
 0x723   : > { %2363 = vmatmul.mubr.msk.f32.gmra.mxu0 %vm578_vm2, %v2094_v20 }
 0x7d9   : > { %v2442_v55 = vpop.f32.mrf.mxu1 }
 0x7da   : > { %1751 = vperm.xlu0 %2511, %v2442_v55  }
 0x7db   : > { %v1735_v57 = vpop.f32.mrf.mxu1  ;;  %v2456_v58 = vpop.f32.mrf.mxu0 }
 0x7dc   : > { %1746 = vperm.xlu1 %2512, %v1735_v57  }
 0x7dd   : > { %v1959_v59 = vpop.f32.mrf.mxu0 }
 0x7de   : > { %1970 = vperm.xlu0 %2511, %v1959_v59  }
 0x7e0   : > { %1975 = vperm.xlu1 %2512, %v2456_v58  }
 0x855   : > { %v1752_v61 = vpop.permute.xlu0 %1751 }
 0x856   : > { %v3007_v62 = vsub.f32 %v1659_v48, %v1752_v61 }
 0x857   : > { %v1747_v63 = vpop.permute.xlu1 %1746 }
 0x858   : > { %v3009_v0 = vsub.f32 %v1657_v39, %v1747_v63  ;;  %v1757_v6 = vmul.f32 %v3007_v62, %v3007_v62 }
 0x859   : > { %v1971_v5 = vpop.permute.xlu0 %1970 }
 0x85a   : > { %v3013_v10 = vsub.f32 %v1658_v50, %v1971_v5  ;;  %1760 = vadd.xlane.f32.xlu1 %v1757_v6  ;;  %v1756_v3 = vmul.f32 %v3009_v0, %v3009_v0 }
 0x85b   : > { %v1976_v4 = vpop.permute.xlu1 %1975 }
 0x85c   : > { %v3017_v8 = vsub.f32 %v1660_v49, %v1976_v4  ;;  %1758 = vadd.xlane.f32.xlu0 %v1756_v3  ;;  %v1980_v12 = vmul.f32 %v3013_v10, %v3013_v10 }
 0x85e   : > { %1982 = vadd.xlane.f32.xlu1 %v1980_v12  ;;  %v1981_v13 = vmul.f32 %v3017_v8, %v3017_v8 }
 0x860   : > { %1984 = vadd.xlane.f32.xlu0 %v1981_v13 }
 0x86f   : > { %1853 = vperm.xlu1 %2512, %v1661_v9  }
 0x873   : > { %1865 = vperm.xlu1 %2512, %v1663_v15  }
 0x876   : > { %1858 = vperm.xlu0 %2511, %v1662_v16  }
 0x87a   : > { %1870 = vperm.xlu0 %2511, %v1664_v19  }
 0x8e3   : > { %v1761_v21 = vpop.xlane.xlu1 %1760 }
 0x8e4   : > { %2443 = vmatprep.subr.mxu1 %v1761_v21 }
 0x8e5   : > { %2444 = vmatpush3.msra.mxu1 %v1761_v21  ;;  %v1759_v22 = vpop.xlane.xlu0 %1758 }
 0x8e6   : > { %2445 = vmatprep.subr.mxu1 %v1759_v22 }
 0x8e7   : > { %2446 = vmatpush3.msra.mxu1 %v1759_v22  ;;  %v1983_v1 = vpop.xlane.xlu1 %1982 }
 0x8e8   : > { %2448 = vmatmul.mubr.msk.f32.vlgmr.msra.gmra.mxu1 %vm859_vm7, %v2855_v60 }
 0x8e9   : > { %v1985_v23 = vpop.xlane.xlu0 %1984  ;;  %2461 = vmatprep.mubr.msk.f32.mxu1 %vm859_vm7, %v2846_v56 }
 0x8ea   : > { %2457 = vmatprep.subr.mxu1 %v1985_v23 }
 0x8eb   : > { %2458 = vmatpush3.msra.mxu1 %v1985_v23  ;;  %v1854_v32 = vpop.permute.xlu1 %1853 }
 0x8ec   : > { %2459 = vmatprep.subr.mxu1 %v1983_v1 }
 0x8ed   : > { %2460 = vmatpush3.msra.mxu1 %v1983_v1 }
 0x8ee   : > { %2462 = vmatmul.mubr.msk.f32.vlgmr.msra.gmra.mxu1 %vm859_vm7, %v2855_v60  ;;  %v2096_v60 = vld [vmem:[%s3126_s13 + $0x8] sm:$0xff] }
 0x8ef   : > { %v1866_v34 = vpop.permute.xlu1 %1865 }
 0x8f1   : > { %v1859_v33 = vpop.permute.xlu0 %1858 }
 0x8f5   : > { %v1871_v35 = vpop.permute.xlu0 %1870 }
 0x9a8   : > { %v2449_v24 = vpop.f32.mrf.mxu1 }
 0x9a9   : > { %v1834_v7 = vadd.f32 1e-05, %v2449_v24 }
 0x9aa   : > { %v1828_v25 = vpop.f32.mrf.mxu1 }
 0x9ab   : > { %2537 = vrsqrt.f32 %v1834_v7  ;;  %v1829_v26 = vadd.f32 1e-05, %v1828_v25 }
 0x9ad   : > { %2539 = vrsqrt.f32 %v1829_v26 }
 0x9ae   : > { %v2463_v11 = vpop.f32.mrf.mxu1 }
 0x9af   : > { %v2058_v2 = vadd.f32 1e-05, %v2463_v11 }
 0x9b0   : > { %v2052_v27 = vpop.f32.mrf.mxu1 }
 0x9b1   : > { %2541 = vrsqrt.f32 %v2058_v2  ;;  %v2053_v28 = vadd.f32 1e-05, %v2052_v27 }
 0x9b3   : > { %2543 = vrsqrt.f32 %v2053_v28 }
 0x9b8   : > { %v2538_v56 = vpop.eup %2537 }
 0x9b9   : > { %1846 = vperm.xlu1 %2512, %v2538_v56  }
 0x9ba   : > { %v2540_v29 = vpop.eup %2539 }
 0x9bb   : > { %1841 = vperm.xlu0 %2511, %v2540_v29  }
 0x9be   : > { %v2542_v30 = vpop.eup %2541 }
 0x9bf   : > { %2070 = vperm.xlu0 %2511, %v2542_v30  }
 0x9c0   : > { %v2544_v31 = vpop.eup %2543 }
 0x9c1   : > { %2065 = vperm.xlu1 %2512, %v2544_v31  }
 0x9c3   : > { %2104 = vperm.xlu0 %2511, %v2096_v60  }
 0x9c5   : > { %2099 = vperm.xlu1 %2512, %v2095_v17  }
 0xa34   : > { %v1847_v36 = vpop.permute.xlu1 %1846 }
 0xa35   : > { %v1850_v14 = vmul.f32 %v1847_v36, %v3007_v62 }
 0xa36   : > { %v1842_v37 = vpop.permute.xlu0 %1841 }
 0xa37   : > { %v1862_v38 = vmul.f32 %v1859_v33, %v1850_v14  ;;  %v1849_v39 = vmul.f32 %v1842_v37, %v3009_v0  ;;  %v2179_v0 = vpop.f32.mrf.mxu0 }
 0xa39   : > { %v1874_v40 = vadd.f32 %v1871_v35, %v1862_v38  ;;  %v1861_v41 = vmul.f32 %v1854_v32, %v1849_v39  ;;  %v2181_v5 = vpop.f32.mrf.mxu0 }
 0xa3a   : > { %v2071_v42 = vpop.permute.xlu0 %2070 }
 0xa3b   : > { %v2355_v43 = vmul.f32 -1.442695, %v1874_v40  ;;  %v1873_v44 = vadd.f32 %v1866_v34, %v1861_v41  ;;  %v2074_v45 = vmul.f32 %v2071_v42, %v3017_v8  ;;  %v2185_v4 = vpop.f32.mrf.mxu0 }
 0xa3c   : > { %v2066_v46 = vpop.permute.xlu1 %2065 }
 0xa3d   : > { %2545 = vpow2.f32 %v2355_v43  ;;  %v2354_v47 = vmul.f32 -1.442695, %v1873_v44  ;;  %v2076_v48 = vmul.f32 %v2074_v45, %v1859_v33  ;;  %v2073_v49 = vmul.f32 %v2066_v46, %v3013_v10  ;;  %v2187_v19 = vpop.f32.mrf.mxu0 }
 0xa3e   : > { %v2105_v10 = vpop.permute.xlu0 %2104 }
 0xa3f   : > { %2547 = vpow2.f32 %v2354_v47  ;;  %v2078_v50 = vadd.f32 %v2076_v48, %v1871_v35  ;;  %v2075_v51 = vmul.f32 %v2073_v49, %v1854_v32  ;;  %v2186_v13 = vadd.f32 %v2185_v4, %v2105_v10 }
 0xa40   : > { %v2100_v8 = vpop.permute.xlu1 %2099  ;;  %v2188_v23 = vadd.f32 %v2187_v19, %v2105_v10 }
 0xa41   : > { %v2361_v52 = vmul.f32 -1.442695, %v2078_v50  ;;  %v2077_v53 = vadd.f32 %v2075_v51, %v1866_v34  ;;  %v2180_v18 = vadd.f32 %v2179_v0, %v2100_v8  ;;  %v2182_v25 = vadd.f32 %v2181_v5, %v2100_v8 }
 0xa43   : > { %2549 = vpow2.f32 %v2361_v52  ;;  %v2360_v54 = vmul.f32 -1.442695, %v2077_v53 }
 0xa45   : > { %2551 = vpow2.f32 %v2360_v54 }
 0xa4a   : > { %v2546_v55 = vpop.eup %2545 }
 0xa4b   : > { %v1882_v57 = vadd.f32 1.0, %v2546_v55 }
 0xa4c   : > { %v2548_v58 = vpop.eup %2547 }
 0xa4d   : > { %2553 = vrcp.f32 %v1882_v57  ;;  %v1881_v59 = vadd.f32 1.0, %v2548_v58 }
 0xa4f   : > { %2555 = vrcp.f32 %v1881_v59 }
 0xa50   : > { %v2550_v61 = vpop.eup %2549 }
 0xa51   : > { %v2086_v62 = vadd.f32 1.0, %v2550_v61 }
 0xa52   : > { %v2552_v63 = vpop.eup %2551 }
 0xa53   : > { %2557 = vrcp.f32 %v2086_v62  ;;  %v2085_v6 = vadd.f32 1.0, %v2552_v63 }
 0xa55   : > { %2559 = vrcp.f32 %v2085_v6 }
 0xa5a   : > { %v2554_v3 = vpop.eup %2553 }
 0xa5b   : > { %v1888_v12 = vmul.f32 %v2554_v3, %v1874_v40 }
 0xa5c   : > { %v2556_v9 = vpop.eup %2555 }
 0xa5d   : > { %v2192_v15 = vadd.f32 %v2186_v13, %v1888_v12  ;;  %v1887_v16 = vmul.f32 %v2556_v9, %v1873_v44 }
 0xa5f   : > { %2195 = vst [vmem:[%s497_s18 + $0x8] sm:$0xff] %v2192_v15  ;;  %v2190_v20 = vadd.f32 %v2180_v18, %v1887_v16 }
 0xa60   : > { %v2558_v21 = vpop.eup %2557 }
 0xa61   : > { %v2092_v22 = vmul.f32 %v2558_v21, %v2078_v50  ;;  %2194 = vst [vmem:[%s497_s18] sm:$0xff] %v2190_v20 }
 0xa62   : > { %v2560_v1 = vpop.eup %2559 }
 0xa63   : > { %v2193_v24 = vadd.f32 %v2188_v23, %v2092_v22  ;;  %v2091_v7 = vmul.f32 %v2560_v1, %v2077_v53 }
 0xa65   : > { %2365 = vst [vmem:[%s497_s18 + $0x18] sm:$0xff] %v2193_v24  ;;  %v2191_v26 = vadd.f32 %v2182_v25, %v2091_v7 }
 0xa67   : > { %2364 = vst [vmem:[%s497_s18 + $0x10] sm:$0xff] %v2191_v26 }
 0xa68   : > { %2574 = shalt.err (!%p2571_p3)
}
 0xa69   : > { %s2575_s3 = scalar_lea.hbm %s3069_s27, 512  ;;  %s2579_s28 = scalar_lea.hbm %s3127_s14, 1024 }
 0xa6a   : > { %p2576_p4 = scmp.ne.s32.totalorder %s3069_s27, %s2575_s3  ;;  %p2580_p9 = scmp.lt.s32.totalorder %s3069_s27, %s3127_s14 }
 0xa6b   : > { %p2581_p10 = scmp.lt.s32.totalorder %s2579_s28, %s2575_s3 }
 0xa6c   : > { %p2577_p7 = pnand %p2576_p4, %p2743_p5 }
 0xa6d   : > { %p2582_p11 = por %p2581_p10, %p2580_p9 }
 0xa6e   : > { %p2578_p8 = pneg %p2577_p7 }
 0xa70   : > { %p2583_p12 = pnand %p2582_p11, %p2578_p8 }
 0xa72   : > { %2586 = shalt.err (!%p2583_p12)
}
 0xa73   : > { %s2628_s1 = smov 128   ;;  %s2629_s2 = smov 8  }
 0xa74   : > { %2466 = dma.vmem_to_hbm [thread:$0]  (%p2743_p5), %s3064_s25, 512, %s3069_s27, %s3073_s0, %s2628_s1, %s2628_s1, %s2629_s2  }
 0xa75 PF: > { %p2472_p13 = scmp.ge.s32.totalorder %s2621_s16, 2  ;;  %s2229_s17 = sand.u32 1, %s2609_s29  }
 0xa76   : > { %s2230_s3 = scalar_lea.sflag [#allocation3], %s2229_s17 }
 0xa77   : > { %p2469_p0 = pnand %p2472_p13, %p2747_p6 }
 0xa79   : > { %p2470_p1 = pneg %p2469_p0 }
 0xa7b   : > { %2604 = dma.done.wait (%p2470_p1), %s2230_s3, 512  }
 0xa7c   : > { %2606 = vsyncadd (%p2470_p1), %s2230_s3, 4294966784  ;;  %p24_p2 = scmp.ge.s32.totalorder %s2730_s19, 4   ;;  %s3148_s29 = smov %s2613_s30 }
 0xa7d   : > { %s3149_s30 = smov %s2617_s15  ;;  %s3150_s15 = smov %s2741_s22 }
 0xa7e   : > { %s3151_s16 = smov %s2730_s19  ;;  %26 = sbr.rel (!%p24_p2) target bundleno = 8 (0x8), region = 125 }
 0xa83   :  { %2235 = vsyncpa [#allocation3], 1 }
 0xa84   :  { %2237 = vsyncpa [#allocation3 + $0x1], 1 }

</bundles_post_ra>
